<compile_context>
chip_gen: v7x
topology: tpu7x:2x2x1
jax: 0.10.0
libtpu: 0.0.40
codegen_flags: <defaults>
</compile_context>

<pallas_src>
import functools

import jax
import jax.numpy as jnp
from jax.experimental import pallas as pl
from jax.experimental.pallas import tpu as pltpu


# Feed the MXU bf16 operands (f32 accumulation) and store the inter-stage
# activation as bf16.  Elementwise math / statistics stay f32 (v5e-safe).
MXU_BF16 = True

_OP_DTYPE = jnp.bfloat16 if MXU_BF16 else jnp.float32    # MXU operand dtype
_ACT_DTYPE = jnp.bfloat16 if MXU_BF16 else jnp.float32   # inter-stage activation


def _vmem_budget_bytes():
    """~75% of this generation's per-core VMEM (64 MiB v7x, 128 MiB v5e/v6e)."""
    try:
        cap = int(pltpu.get_tpu_info().vmem_capacity_bytes)
    except Exception:
        cap = 64 * 1024 * 1024
    return cap * 3 // 4


# ----------------------------- Pallas kernel -------------------------------

def _conv_stage_kernel(*refs, fuse_input_bn_relu, imgs_per_block, img_h):
    """Fused: [BN+ReLU of previous stage] -> conv3x3(pad=1) -> BN partial stats.

    Refs (inputs, outputs, scratch); grid is 1-D over groups of B images:
      x_ref     : (B, H, W*Cin)      raw activation block
      [in_scale_ref, in_shift_ref : (1, W*Cin)]   (only when fuse_input_bn_relu)
      w_ref     : (3, W*Cin, W*Cout) banded conv weights (one slab per dy tap)
      y_ref     : (B, H, W*Cout)     raw conv output (pre-BN)
      stats_ref : (1, 2, W*Cout)     packed per-block (sum, sum_sq) column stats
      xp_ref    : (B*(H+2), W*Cin)   VMEM scratch: B images stacked with zero
                                     H-halo -> each dy tap is ONE tall matmul.
    """
    if fuse_input_bn_relu:
        (x_ref, in_scale_ref, in_shift_ref, w_ref, y_ref, stats_ref, xp_ref) = refs
    else:
        (x_ref, w_ref, y_ref, stats_ref, xp_ref) = refs

    B, H = imgs_per_block, img_h
    K = x_ref.shape[-1]            # W*Cin
    Co = y_ref.shape[-1]           # W*Cout
    Hp = H + 2

    xi = x_ref[...]                                          # (B, H, K)
    if fuse_input_bn_relu:
        # Previous stage's BatchNorm + ReLU, applied in-register in f32.
        xi = jnp.maximum(xi.astype(jnp.float32) * in_scale_ref[...]
                         + in_shift_ref[...], 0.0)
    xi = xi.astype(xp_ref.dtype)     # single hoisted cast to the MXU operand dtype

    # Stack the B images into the padded scratch.  Halo rows are re-zeroed
    # every step (2*B single-row stores) because a pl.when(program_id==0)
    # one-time init is not megacore-safe (per-core scratch, see header).
    zrow = jnp.zeros((1, K), xp_ref.dtype)
    for b in range(B):                                       # static unroll
        s = b * Hp
        xp_ref[s:s + 1, :] = zrow
        xp_ref[s + 1:s + 1 + H, :] = xi[b]
        xp_ref[s + 1 + H:s + 2 + H, :] = zrow

    # One tall MXU matmul per vertical tap dy (M = B*(H+2)); the dx taps and
    # pad=1 along W are folded into the banded weight slabs.  f32 accumulate.
    xp = xp_ref[...]                                         # (B*Hp, K)
    p0 = jnp.dot(xp, w_ref[0], preferred_element_type=jnp.float32)
    p1 = jnp.dot(xp, w_ref[1], preferred_element_type=jnp.float32)
    p2 = jnp.dot(xp, w_ref[2], preferred_element_type=jnp.float32)

    # Per-image valid-row extraction (output row i uses padded rows i, i+1, i+2),
    # lane-dense store, and fused BatchNorm partial statistics (column sums,
    # XLU reductions).  Stats are accumulated in-register and stored once.
    psum = jnp.zeros((1, Co), jnp.float32)
    psq = jnp.zeros((1, Co), jnp.float32)
    for b in range(B):                                       # static unroll
        s = b * Hp
        acc = p0[s:s + H] + p1[s + 1:s + 1 + H] + p2[s + 2:s + 2 + H]  # (H, Co) f32
        y_ref[b] = acc.astype(y_ref.dtype)
        psum = psum + jnp.sum(acc, axis=0, keepdims=True)
        psq = psq + jnp.sum(acc * acc, axis=0, keepdims=True)
    stats_ref[0:1, 0:1, :] = psum.reshape(1, 1, Co)
    stats_ref[0:1, 1:2, :] = psq.reshape(1, 1, Co)


# ----------------------------- Pallas wrapper ------------------------------

def conv_stage(x, w_big, *, in_scale=None, in_shift=None, out_dtype=jnp.float32):
    """One fused conv stage.

    x       : (N, H, W*Cin)  activation in the lane-dense NHWC-flattened layout
    w_big   : (3, W*Cin, W*Cout) banded weights (already in the MXU operand dtype)
    in_scale/in_shift : optional (1, W*Cin) f32 — fuse previous stage's BN+ReLU.

    Returns (y_raw, stats):
      y_raw : (N, H, W*Cout)   raw conv output (pre-BN), dtype `out_dtype`
      stats : (G, 2, W*Cout)   per-block packed (column sum, column sum_sq), f32
    """
    N, H, K = x.shape
    Co = w_big.shape[2]
    op_b = jnp.dtype(w_big.dtype).itemsize
    x_b = jnp.dtype(x.dtype).itemsize
    y_b = jnp.dtype(out_dtype).itemsize
    budget = _vmem_budget_bytes()

    def est(b):                     # per-step VMEM footprint estimate (bytes)
        return (2 * b * H * K * x_b          # input blocks   (double-buffered)
                + 3 * K * Co * op_b          # banded weights (single-buffered)
                + 2 * b * H * Co * y_b       # output blocks  (double-buffered)
                + 2 * 2 * Co * 4             # packed stats blocks
                + b * (H + 2) * K * op_b)    # padded scratch

    # Pick images-per-block: target ~256 MXU rows, divide N, fit the budget.
    B = max(1, min(N, 256 // max(H, 1)))
    while B > 1 and (N % B != 0 or est(B) > budget):
        B -= 1
    assert est(B) <= budget, (
        "single-image tile exceeds the VMEM budget; "
        "TODO(synk): tile H with halo DMA + 9-tap (Cin x Cout) accumulation")
    G = N // B
    vmem_limit = int(min(budget, max(4 * est(B), 32 * 1024 * 1024)))

    fuse = in_scale is not None
    kernel = functools.partial(_conv_stage_kernel, fuse_input_bn_relu=fuse,
                               imgs_per_block=B, img_h=H)

    resident = pl.Buffered(1)   # grid-invariant blocks: no benefit from 2 buffers
    in_specs = [pl.BlockSpec((B, H, K), lambda i: (i, 0, 0))]
    args = [x]
    if fuse:
        in_specs += [pl.BlockSpec((1, K), lambda i: (0, 0), pipeline_mode=resident),
                     pl.BlockSpec((1, K), lambda i: (0, 0), pipeline_mode=resident)]
        args += [in_scale, in_shift]
    in_specs += [pl.BlockSpec((3, K, Co), lambda i: (0, 0, 0), pipeline_mode=resident)]
    args += [w_big]

    out_shape = (jax.ShapeDtypeStruct((N, H, Co), out_dtype),
                 jax.ShapeDtypeStruct((G, 2, Co), jnp.float32))
    out_specs = (pl.BlockSpec((B, H, Co), lambda i: (i, 0, 0)),
                 pl.BlockSpec((1, 2, Co), lambda i: (i, 0, 0)))

    return pl.pallas_call(
        kernel,
        out_shape=out_shape,
        grid=(G,),
        in_specs=in_specs,
        out_specs=out_specs,
        scratch_shapes=[pltpu.VMEM((B * (H + 2), K), w_big.dtype)],
        compiler_params=pltpu.CompilerParams(
            dimension_semantics=("parallel",),     # per-image-group blocks
            vmem_limit_bytes=vmem_limit),
    )(*args)


# ------------------------------- glue (JAX) --------------------------------

def make_banded_weights(w_oihw, W, dtype):
    """(Cout, Cin, 3, 3) -> (3, W*Cin, W*Cout) banded matrix per vertical tap dy.

    big[dy, wi*Cin+ci, wo*Cout+co] = w[co, ci, dy, dx]  where  wi = wo + dx - 1
    (out-of-range wi entries are absent => implements pad=1 along W).
    """
    Cout, Cin, KH, KW = w_oihw.shape
    assert KH == 3 and KW == 3
    w_t = jnp.transpose(w_oihw, (2, 3, 1, 0)).astype(jnp.float32)  # (dy, dx, Cin, Cout)
    wi = jnp.arange(W)
    wo = jnp.arange(W)
    dx = jnp.arange(3)
    mask = (wi[None, :, None] ==
            (wo[None, None, :] + dx[:, None, None] - 1)).astype(jnp.float32)  # (3, W, W)
    big = jnp.einsum('xiw,yxco->yicwo', mask, w_t)                  # (3, W, Cin, W, Cout)
    return big.reshape(3, W * Cin, W * Cout).astype(dtype)


def bn_affine_from_stats(stats, gamma, beta, count, W, C, eps=1e-5):
    """Fold packed per-block (sum, sum_sq) partials to lane-tiled scale/shift."""
    s = jnp.sum(stats[:, 0, :], axis=0).reshape(W, C).sum(axis=0)   # (C,)
    q = jnp.sum(stats[:, 1, :], axis=0).reshape(W, C).sum(axis=0)   # (C,)
    mean = s / count
    # TODO(synk): E[x^2]-E[x]^2 cancels badly for extreme |mean|/std ratios;
    # switch to a centered / Welford-style fold for such input scales.
    var = jnp.maximum(q / count - mean * mean, 0.0)
    inv_std = jax.lax.rsqrt(var + eps)
    scale = gamma * inv_std
    shift = beta - mean * scale
    # Lane layout: index = w*C + c  ->  tile the per-channel vectors W times.
    scale_t = jnp.tile(scale, (W,)).reshape(1, W * C)
    shift_t = jnp.tile(shift, (W,)).reshape(1, W * C)
    return scale_t, shift_t


def make_params(key, in_c, out_c):
    """Parameters mirroring the PyTorch module (conv biases are created for
    interface parity but intentionally unused: training-mode BN cancels them)."""
    params = {}
    for idx, (ci, co) in enumerate(((in_c, out_c), (out_c, out_c)), start=1):
        key, kw, kb = jax.random.split(key, 3)
        bound = 1.0 / jnp.sqrt(ci * 9.0)
        params[f"conv{idx}_w"] = jax.random.uniform(
            kw, (co, ci, 3, 3), jnp.float32, -bound, bound)
        params[f"conv{idx}_b"] = jax.random.uniform(
            kb, (co,), jnp.float32, -bound, bound)
        params[f"bn{idx}_gamma"] = jnp.ones((co,), jnp.float32)
        params[f"bn{idx}_beta"] = jnp.zeros((co,), jnp.float32)
    return params


@jax.jit
def convolution_forward(x_nchw, params):
    """Equivalent of Convolution.forward.  Input/output layout: NCHW."""
    N, Cin, H, W = x_nchw.shape
    C1 = params["conv1_w"].shape[0]
    C2 = params["conv2_w"].shape[0]

    # NCHW -> lane-dense (N, H, W*Cin).  Everything in between stays lane-dense.
    x = jnp.transpose(x_nchw, (0, 2, 3, 1)).astype(jnp.float32).reshape(N, H, W * Cin)

    w1 = make_banded_weights(params["conv1_w"], W, _OP_DTYPE)
    w2 = make_banded_weights(params["conv2_w"], W, _OP_DTYPE)

    # Stage 1: conv1 + fused batch statistics (bias dropped: cancelled by BN).
    y1, st1 = conv_stage(x, w1, out_dtype=_ACT_DTYPE)
    s1, h1 = bn_affine_from_stats(st1, params["bn1_gamma"], params["bn1_beta"],
                                  N * H * W, W, C1)

    # Stage 2: BN1+ReLU fused into conv2's input path + fused batch statistics.
    y2, st2 = conv_stage(y1, w2, in_scale=s1, in_shift=h1, out_dtype=jnp.float32)
    s2, h2 = bn_affine_from_stats(st2, params["bn2_gamma"], params["bn2_beta"],
                                  N * H * W, W, C2)

    # Final BN2 + ReLU folded into the NCHW-transpose epilogue (XLA fuses the
    # elementwise with the transpose -> no extra activation HBM round-trip).
    out = jnp.maximum(y2 * s2 + h2, 0.0)                          # (N, H, W*C2)
    return jnp.transpose(out.reshape(N, H, W, C2), (0, 3, 1, 2))


# ----------------------------- pure-JAX reference ---------------------------

def _reference_forward(x_nchw, params, eps=1e-5):
    """Straight JAX/XLA port of the PyTorch module (includes conv bias)."""
    def stage(x, w, b, gamma, beta):
        y = jax.lax.conv_general_dilated(
            x, w, window_strides=(1, 1), padding=((1, 1), (1, 1)),
            dimension_numbers=("NCHW", "OIHW", "NCHW"))
        y = y + b.reshape(1, -1, 1, 1)
        mean = y.mean(axis=(0, 2, 3), keepdims=True)
        var = y.var(axis=(0, 2, 3), keepdims=True)      # biased, BN training mode
        yhat = (y - mean) * jax.lax.rsqrt(var + eps)
        yhat = yhat * gamma.reshape(1, -1, 1, 1) + beta.reshape(1, -1, 1, 1)
        return jnp.maximum(yhat, 0.0)

    x = stage(x_nchw, params["conv1_w"], params["conv1_b"],
              params["bn1_gamma"], params["bn1_beta"])
    x = stage(x, params["conv2_w"], params["conv2_b"],
              params["bn2_gamma"], params["bn2_beta"])
    return x


if __name__ == "__main__":
    key = jax.random.PRNGKey(0)
    key, kx, kp = jax.random.split(key, 3)

    N, in_c, out_c, H, W = 2, 4, 8, 16, 16
    x = jax.random.normal(kx, (N, in_c, H, W), jnp.float32)       # NCHW input
    params = make_params(kp, in_c, out_c)

    out = jax.block_until_ready(convolution_forward(x, params))

    assert out.shape == (N, out_c, H, W), out.shape
    assert out.dtype == jnp.float32
    assert bool(jnp.all(jnp.isfinite(out)))
    assert bool(jnp.all(out >= 0.0))                              # ReLU output

    ref = _reference_forward(x, params)
    # bf16 MXU operands + bf16 inter-stage activation -> re-validated tolerance.
    atol, rtol = (7e-2, 2e-2) if MXU_BF16 else (2e-2, 2e-2)
    max_diff = float(jnp.max(jnp.abs(out - ref)))
    assert bool(jnp.allclose(out, ref, atol=atol, rtol=rtol)), f"max|diff|={max_diff}"

    print("KERNEL_OK")
</pallas_src>

<mosaic_0001>
module attributes {stable_mosaic.version = 11 : i64} {
  func.func @_conv_stage_kernel(%arg0: i32, %arg1: memref<2x16x64xf32, #tpu.memory_space<vmem>>, %arg2: memref<3x64x128xbf16, #tpu.memory_space<vmem>>, %arg3: memref<2x16x128xbf16, #tpu.memory_space<vmem>>, %arg4: memref<1x2x128xf32, #tpu.memory_space<vmem>>, %arg5: memref<36x64xbf16, #tpu.memory_space<vmem>>) attributes {dimension_semantics = [#tpu.dimension_semantics<parallel>], iteration_bounds = array<i64: 1>, scalar_prefetch = 0 : i64, scratch_operands = 1 : i64, tpu.core_type = #tpu.core_type<tc>, window_params = [{transform_indices = @transform_0, window_bounds = array<i64: 2, 16, 64>}, {pipeline_mode = #tpu.pipeline_mode<synchronous>, transform_indices = @transform_1, window_bounds = array<i64: 3, 64, 128>}, {transform_indices = @transform_2, window_bounds = array<i64: 2, 16, 128>}, {transform_indices = @transform_3, window_bounds = array<i64: 1, 2, 128>}]} {
    %c0 = arith.constant 0 : index
    %c0_0 = arith.constant 0 : index
    %c0_1 = arith.constant 0 : index
    %0 = vector.load %arg1[%c0, %c0_0, %c0_1] : memref<2x16x64xf32, #tpu.memory_space<vmem>>, vector<2x16x64xf32>
    %1 = arith.truncf %0 : vector<2x16x64xf32> to vector<2x16x64xbf16>
    %cst = arith.constant 0.000000e+00 : bf16
    %2 = vector.broadcast %cst : bf16 to vector<1x64xbf16>
    %c0_2 = arith.constant 0 : index
    %c0_3 = arith.constant 0 : index
    %3 = vector.load %arg5[%c0_2, %c0_3] : memref<36x64xbf16, #tpu.memory_space<vmem>>, vector<1x64xbf16>
    tpu.vector_store %arg5[%c0_2, %c0_3], %2 {strides = array<i32>} : memref<36x64xbf16, #tpu.memory_space<vmem>>, vector<1x64xbf16>,
    %4 = vector.extract_strided_slice %1 {offsets = [0, 0, 0], sizes = [1, 16, 64], strides = [1, 1, 1]} : vector<2x16x64xbf16> to vector<1x16x64xbf16>
    %5 = vector.shape_cast %4 : vector<1x16x64xbf16> to vector<16x64xbf16>
    %c1 = arith.constant 1 : index
    %c0_4 = arith.constant 0 : index
    %6 = vector.load %arg5[%c1, %c0_4] : memref<36x64xbf16, #tpu.memory_space<vmem>>, vector<16x64xbf16>
    tpu.vector_store %arg5[%c1, %c0_4], %5 {strides = array<i32>} : memref<36x64xbf16, #tpu.memory_space<vmem>>, vector<16x64xbf16>,
    %c17 = arith.constant 17 : index
    %c0_5 = arith.constant 0 : index
    %7 = vector.load %arg5[%c17, %c0_5] : memref<36x64xbf16, #tpu.memory_space<vmem>>, vector<1x64xbf16>
    tpu.vector_store %arg5[%c17, %c0_5], %2 {strides = array<i32>} : memref<36x64xbf16, #tpu.memory_space<vmem>>, vector<1x64xbf16>,
    %c18 = arith.constant 18 : index
    %c0_6 = arith.constant 0 : index
    %8 = vector.load %arg5[%c18, %c0_6] : memref<36x64xbf16, #tpu.memory_space<vmem>>, vector<1x64xbf16>
    tpu.vector_store %arg5[%c18, %c0_6], %2 {strides = array<i32>} : memref<36x64xbf16, #tpu.memory_space<vmem>>, vector<1x64xbf16>,
    %9 = vector.extract_strided_slice %1 {offsets = [1, 0, 0], sizes = [1, 16, 64], strides = [1, 1, 1]} : vector<2x16x64xbf16> to vector<1x16x64xbf16>
    %10 = vector.shape_cast %9 : vector<1x16x64xbf16> to vector<16x64xbf16>
    %c19 = arith.constant 19 : index
    %c0_7 = arith.constant 0 : index
    %11 = vector.load %arg5[%c19, %c0_7] : memref<36x64xbf16, #tpu.memory_space<vmem>>, vector<16x64xbf16>
    tpu.vector_store %arg5[%c19, %c0_7], %10 {strides = array<i32>} : memref<36x64xbf16, #tpu.memory_space<vmem>>, vector<16x64xbf16>,
    %c35 = arith.constant 35 : index
    %c0_8 = arith.constant 0 : index
    %12 = vector.load %arg5[%c35, %c0_8] : memref<36x64xbf16, #tpu.memory_space<vmem>>, vector<1x64xbf16>
    tpu.vector_store %arg5[%c35, %c0_8], %2 {strides = array<i32>} : memref<36x64xbf16, #tpu.memory_space<vmem>>, vector<1x64xbf16>,
    %c0_9 = arith.constant 0 : index
    %c0_10 = arith.constant 0 : index
    %13 = vector.load %arg5[%c0_9, %c0_10] : memref<36x64xbf16, #tpu.memory_space<vmem>>, vector<36x64xbf16>
    %c0_11 = arith.constant 0 : index
    %c0_12 = arith.constant 0 : index
    %c0_13 = arith.constant 0 : index
    %14 = vector.load %arg2[%c0_11, %c0_12, %c0_13] : memref<3x64x128xbf16, #tpu.memory_space<vmem>>, vector<1x64x128xbf16>
    %15 = vector.shape_cast %14 : vector<1x64x128xbf16> to vector<64x128xbf16>
    %cst_14 = arith.constant dense<0.000000e+00> : vector<36x128xf32>
    %16 = tpu.matmul %13, %15, %cst_14 {dimension_numbers = #tpu.dot_dimension_numbers<[1], [0], [0], [1], [0, 0, 1, 1], [], []>} : vector<36x64xbf16>, vector<64x128xbf16>, vector<36x128xf32> -> vector<36x128xf32>
    %c1_15 = arith.constant 1 : index
    %c0_16 = arith.constant 0 : index
    %c0_17 = arith.constant 0 : index
    %17 = vector.load %arg2[%c1_15, %c0_16, %c0_17] : memref<3x64x128xbf16, #tpu.memory_space<vmem>>, vector<1x64x128xbf16>
    %18 = vector.shape_cast %17 : vector<1x64x128xbf16> to vector<64x128xbf16>
    %cst_18 = arith.constant dense<0.000000e+00> : vector<36x128xf32>
    %19 = tpu.matmul %13, %18, %cst_18 {dimension_numbers = #tpu.dot_dimension_numbers<[1], [0], [0], [1], [0, 0, 1, 1], [], []>} : vector<36x64xbf16>, vector<64x128xbf16>, vector<36x128xf32> -> vector<36x128xf32>
    %c2 = arith.constant 2 : index
    %c0_19 = arith.constant 0 : index
    %c0_20 = arith.constant 0 : index
    %20 = vector.load %arg2[%c2, %c0_19, %c0_20] : memref<3x64x128xbf16, #tpu.memory_space<vmem>>, vector<1x64x128xbf16>
    %21 = vector.shape_cast %20 : vector<1x64x128xbf16> to vector<64x128xbf16>
    %cst_21 = arith.constant dense<0.000000e+00> : vector<36x128xf32>
    %22 = tpu.matmul %13, %21, %cst_21 {dimension_numbers = #tpu.dot_dimension_numbers<[1], [0], [0], [1], [0, 0, 1, 1], [], []>} : vector<36x64xbf16>, vector<64x128xbf16>, vector<36x128xf32> -> vector<36x128xf32>
    %cst_22 = arith.constant 0.000000e+00 : f32
    %23 = vector.broadcast %cst_22 : f32 to vector<1x128xf32>
    %cst_23 = arith.constant 0.000000e+00 : f32
    %24 = vector.broadcast %cst_23 : f32 to vector<1x128xf32>
    %25 = vector.extract_strided_slice %16 {offsets = [0, 0], sizes = [16, 128], strides = [1, 1]} : vector<36x128xf32> to vector<16x128xf32>
    %26 = vector.extract_strided_slice %19 {offsets = [1, 0], sizes = [16, 128], strides = [1, 1]} : vector<36x128xf32> to vector<16x128xf32>
    %27 = arith.addf %25, %26 : vector<16x128xf32>
    %28 = vector.extract_strided_slice %22 {offsets = [2, 0], sizes = [16, 128], strides = [1, 1]} : vector<36x128xf32> to vector<16x128xf32>
    %29 = arith.addf %27, %28 : vector<16x128xf32>
    %30 = arith.truncf %29 : vector<16x128xf32> to vector<16x128xbf16>
    %c0_24 = arith.constant 0 : index
    %c0_25 = arith.constant 0 : index
    %c0_26 = arith.constant 0 : index
    %31 = vector.load %arg3[%c0_24, %c0_25, %c0_26] : memref<2x16x128xbf16, #tpu.memory_space<vmem>>, vector<1x16x128xbf16>
    %32 = vector.shape_cast %31 : vector<1x16x128xbf16> to vector<16x128xbf16>
    %33 = vector.shape_cast %30 : vector<16x128xbf16> to vector<1x16x128xbf16>
    tpu.vector_store %arg3[%c0_24, %c0_25, %c0_26], %33 {strides = array<i32>} : memref<2x16x128xbf16, #tpu.memory_space<vmem>>, vector<1x16x128xbf16>,
    %cst_27 = arith.constant dense<0.000000e+00> : vector<128xf32>
    %34 = vector.multi_reduction <add>, %29, %cst_27 [0] : vector<16x128xf32> to vector<128xf32>
    %35 = vector.shape_cast %34 : vector<128xf32> to vector<1x128xf32>
    %36 = arith.addf %23, %35 : vector<1x128xf32>
    %37 = arith.mulf %29, %29 : vector<16x128xf32>
    %cst_28 = arith.constant dense<0.000000e+00> : vector<128xf32>
    %38 = vector.multi_reduction <add>, %37, %cst_28 [0] : vector<16x128xf32> to vector<128xf32>
    %39 = vector.shape_cast %38 : vector<128xf32> to vector<1x128xf32>
    %40 = arith.addf %24, %39 : vector<1x128xf32>
    %41 = vector.extract_strided_slice %16 {offsets = [18, 0], sizes = [16, 128], strides = [1, 1]} : vector<36x128xf32> to vector<16x128xf32>
    %42 = vector.extract_strided_slice %19 {offsets = [19, 0], sizes = [16, 128], strides = [1, 1]} : vector<36x128xf32> to vector<16x128xf32>
    %43 = arith.addf %41, %42 : vector<16x128xf32>
    %44 = vector.extract_strided_slice %22 {offsets = [20, 0], sizes = [16, 128], strides = [1, 1]} : vector<36x128xf32> to vector<16x128xf32>
    %45 = arith.addf %43, %44 : vector<16x128xf32>
    %46 = arith.truncf %45 : vector<16x128xf32> to vector<16x128xbf16>
    %c1_29 = arith.constant 1 : index
    %c0_30 = arith.constant 0 : index
    %c0_31 = arith.constant 0 : index
    %47 = vector.load %arg3[%c1_29, %c0_30, %c0_31] : memref<2x16x128xbf16, #tpu.memory_space<vmem>>, vector<1x16x128xbf16>
    %48 = vector.shape_cast %47 : vector<1x16x128xbf16> to vector<16x128xbf16>
    %49 = vector.shape_cast %46 : vector<16x128xbf16> to vector<1x16x128xbf16>
    tpu.vector_store %arg3[%c1_29, %c0_30, %c0_31], %49 {strides = array<i32>} : memref<2x16x128xbf16, #tpu.memory_space<vmem>>, vector<1x16x128xbf16>,
    %cst_32 = arith.constant dense<0.000000e+00> : vector<128xf32>
    %50 = vector.multi_reduction <add>, %45, %cst_32 [0] : vector<16x128xf32> to vector<128xf32>
    %51 = vector.shape_cast %50 : vector<128xf32> to vector<1x128xf32>
    %52 = arith.addf %36, %51 : vector<1x128xf32>
    %53 = arith.mulf %45, %45 : vector<16x128xf32>
    %cst_33 = arith.constant dense<0.000000e+00> : vector<128xf32>
    %54 = vector.multi_reduction <add>, %53, %cst_33 [0] : vector<16x128xf32> to vector<128xf32>
    %55 = vector.shape_cast %54 : vector<128xf32> to vector<1x128xf32>
    %56 = arith.addf %40, %55 : vector<1x128xf32>
    %57 = vector.shape_cast %52 : vector<1x128xf32> to vector<1x1x128xf32>
    %c0_34 = arith.constant 0 : index
    %c0_35 = arith.constant 0 : index
    %c0_36 = arith.constant 0 : index
    %58 = vector.load %arg4[%c0_34, %c0_35, %c0_36] : memref<1x2x128xf32, #tpu.memory_space<vmem>>, vector<1x1x128xf32>
    tpu.vector_store %arg4[%c0_34, %c0_35, %c0_36], %57 {strides = array<i32>} : memref<1x2x128xf32, #tpu.memory_space<vmem>>, vector<1x1x128xf32>,
    %59 = vector.shape_cast %56 : vector<1x128xf32> to vector<1x1x128xf32>
    %c0_37 = arith.constant 0 : index
    %c1_38 = arith.constant 1 : index
    %c0_39 = arith.constant 0 : index
    %60 = vector.load %arg4[%c0_37, %c1_38, %c0_39] : memref<1x2x128xf32, #tpu.memory_space<vmem>>, vector<1x1x128xf32>
    tpu.vector_store %arg4[%c0_37, %c1_38, %c0_39], %59 {strides = array<i32>} : memref<1x2x128xf32, #tpu.memory_space<vmem>>, vector<1x1x128xf32>,
    return
  }
  func.func @transform_0(%arg0: i32) -> (i32, i32, i32) {
    %c0_i32 = arith.constant 0 : i32
    %c0_i32_0 = arith.constant 0 : i32
    %c0_i32_1 = arith.constant 0 : i32
    return %arg0, %c0_i32, %c0_i32_0 : i32, i32, i32
  }
  func.func @transform_1(%arg0: i32) -> (i32, i32, i32) {
    %c0_i32 = arith.constant 0 : i32
    %c0_i32_0 = arith.constant 0 : i32
    %c0_i32_1 = arith.constant 0 : i32
    %c0_i32_2 = arith.constant 0 : i32
    return %c0_i32, %c0_i32_0, %c0_i32_1 : i32, i32, i32
  }
  func.func @transform_2(%arg0: i32) -> (i32, i32, i32) {
    %c0_i32 = arith.constant 0 : i32
    %c0_i32_0 = arith.constant 0 : i32
    %c0_i32_1 = arith.constant 0 : i32
    return %arg0, %c0_i32, %c0_i32_0 : i32, i32, i32
  }
  func.func @transform_3(%arg0: i32) -> (i32, i32, i32) {
    %c0_i32 = arith.constant 0 : i32
    %c0_i32_0 = arith.constant 0 : i32
    %c0_i32_1 = arith.constant 0 : i32
    return %arg0, %c0_i32, %c0_i32_0 : i32, i32, i32
  }
}

module attributes {stable_mosaic.version = 11 : i64} {
  func.func @_conv_stage_kernel(%arg0: i32, %arg1: memref<2x16x128xbf16, #tpu.memory_space<vmem>>, %arg2: memref<1x128xf32, #tpu.memory_space<vmem>>, %arg3: memref<1x128xf32, #tpu.memory_space<vmem>>, %arg4: memref<3x128x128xbf16, #tpu.memory_space<vmem>>, %arg5: memref<2x16x128xf32, #tpu.memory_space<vmem>>, %arg6: memref<1x2x128xf32, #tpu.memory_space<vmem>>, %arg7: memref<36x128xbf16, #tpu.memory_space<vmem>>) attributes {dimension_semantics = [#tpu.dimension_semantics<parallel>], iteration_bounds = array<i64: 1>, scalar_prefetch = 0 : i64, scratch_operands = 1 : i64, tpu.core_type = #tpu.core_type<tc>, window_params = [{transform_indices = @transform_0, window_bounds = array<i64: 2, 16, 128>}, {pipeline_mode = #tpu.pipeline_mode<synchronous>, transform_indices = @transform_1, window_bounds = array<i64: 1, 128>}, {pipeline_mode = #tpu.pipeline_mode<synchronous>, transform_indices = @transform_2, window_bounds = array<i64: 1, 128>}, {pipeline_mode = #tpu.pipeline_mode<synchronous>, transform_indices = @transform_3, window_bounds = array<i64: 3, 128, 128>}, {transform_indices = @transform_4, window_bounds = array<i64: 2, 16, 128>}, {transform_indices = @transform_5, window_bounds = array<i64: 1, 2, 128>}]} {
    %c0 = arith.constant 0 : index
    %c0_0 = arith.constant 0 : index
    %c0_1 = arith.constant 0 : index
    %0 = vector.load %arg1[%c0, %c0_0, %c0_1] : memref<2x16x128xbf16, #tpu.memory_space<vmem>>, vector<2x16x128xbf16>
    %1 = arith.extf %0 : vector<2x16x128xbf16> to vector<2x16x128xf32>
    %c0_2 = arith.constant 0 : index
    %c0_3 = arith.constant 0 : index
    %2 = vector.load %arg2[%c0_2, %c0_3] : memref<1x128xf32, #tpu.memory_space<vmem>>, vector<1x128xf32>
    %3 = vector.shape_cast %2 : vector<1x128xf32> to vector<1x1x128xf32>
    %4 = vector.broadcast %3 : vector<1x1x128xf32> to vector<2x16x128xf32>
    %5 = arith.mulf %1, %4 : vector<2x16x128xf32>
    %c0_4 = arith.constant 0 : index
    %c0_5 = arith.constant 0 : index
    %6 = vector.load %arg3[%c0_4, %c0_5] : memref<1x128xf32, #tpu.memory_space<vmem>>, vector<1x128xf32>
    %7 = vector.shape_cast %6 : vector<1x128xf32> to vector<1x1x128xf32>
    %8 = vector.broadcast %7 : vector<1x1x128xf32> to vector<2x16x128xf32>
    %9 = arith.addf %5, %8 : vector<2x16x128xf32>
    %cst = arith.constant 0.000000e+00 : f32
    %10 = vector.broadcast %cst : f32 to vector<2x16x128xf32>
    %11 = arith.maximumf %9, %10 : vector<2x16x128xf32>
    %12 = arith.truncf %11 : vector<2x16x128xf32> to vector<2x16x128xbf16>
    %cst_6 = arith.constant 0.000000e+00 : bf16
    %13 = vector.broadcast %cst_6 : bf16 to vector<1x128xbf16>
    %c0_7 = arith.constant 0 : index
    %c0_8 = arith.constant 0 : index
    %14 = vector.load %arg7[%c0_7, %c0_8] : memref<36x128xbf16, #tpu.memory_space<vmem>>, vector<1x128xbf16>
    tpu.vector_store %arg7[%c0_7, %c0_8], %13 {strides = array<i32>} : memref<36x128xbf16, #tpu.memory_space<vmem>>, vector<1x128xbf16>,
    %15 = vector.extract_strided_slice %12 {offsets = [0, 0, 0], sizes = [1, 16, 128], strides = [1, 1, 1]} : vector<2x16x128xbf16> to vector<1x16x128xbf16>
    %16 = vector.shape_cast %15 : vector<1x16x128xbf16> to vector<16x128xbf16>
    %c1 = arith.constant 1 : index
    %c0_9 = arith.constant 0 : index
    %17 = vector.load %arg7[%c1, %c0_9] : memref<36x128xbf16, #tpu.memory_space<vmem>>, vector<16x128xbf16>
    tpu.vector_store %arg7[%c1, %c0_9], %16 {strides = array<i32>} : memref<36x128xbf16, #tpu.memory_space<vmem>>, vector<16x128xbf16>,
    %c17 = arith.constant 17 : index
    %c0_10 = arith.constant 0 : index
    %18 = vector.load %arg7[%c17, %c0_10] : memref<36x128xbf16, #tpu.memory_space<vmem>>, vector<1x128xbf16>
    tpu.vector_store %arg7[%c17, %c0_10], %13 {strides = array<i32>} : memref<36x128xbf16, #tpu.memory_space<vmem>>, vector<1x128xbf16>,
    %c18 = arith.constant 18 : index
    %c0_11 = arith.constant 0 : index
    %19 = vector.load %arg7[%c18, %c0_11] : memref<36x128xbf16, #tpu.memory_space<vmem>>, vector<1x128xbf16>
    tpu.vector_store %arg7[%c18, %c0_11], %13 {strides = array<i32>} : memref<36x128xbf16, #tpu.memory_space<vmem>>, vector<1x128xbf16>,
    %20 = vector.extract_strided_slice %12 {offsets = [1, 0, 0], sizes = [1, 16, 128], strides = [1, 1, 1]} : vector<2x16x128xbf16> to vector<1x16x128xbf16>
    %21 = vector.shape_cast %20 : vector<1x16x128xbf16> to vector<16x128xbf16>
    %c19 = arith.constant 19 : index
    %c0_12 = arith.constant 0 : index
    %22 = vector.load %arg7[%c19, %c0_12] : memref<36x128xbf16, #tpu.memory_space<vmem>>, vector<16x128xbf16>
    tpu.vector_store %arg7[%c19, %c0_12], %21 {strides = array<i32>} : memref<36x128xbf16, #tpu.memory_space<vmem>>, vector<16x128xbf16>,
    %c35 = arith.constant 35 : index
    %c0_13 = arith.constant 0 : index
    %23 = vector.load %arg7[%c35, %c0_13] : memref<36x128xbf16, #tpu.memory_space<vmem>>, vector<1x128xbf16>
    tpu.vector_store %arg7[%c35, %c0_13], %13 {strides = array<i32>} : memref<36x128xbf16, #tpu.memory_space<vmem>>, vector<1x128xbf16>,
    %c0_14 = arith.constant 0 : index
    %c0_15 = arith.constant 0 : index
    %24 = vector.load %arg7[%c0_14, %c0_15] : memref<36x128xbf16, #tpu.memory_space<vmem>>, vector<36x128xbf16>
    %c0_16 = arith.constant 0 : index
    %c0_17 = arith.constant 0 : index
    %c0_18 = arith.constant 0 : index
    %25 = vector.load %arg4[%c0_16, %c0_17, %c0_18] : memref<3x128x128xbf16, #tpu.memory_space<vmem>>, vector<1x128x128xbf16>
    %26 = vector.shape_cast %25 : vector<1x128x128xbf16> to vector<128x128xbf16>
    %cst_19 = arith.constant dense<0.000000e+00> : vector<36x128xf32>
    %27 = tpu.matmul %24, %26, %cst_19 {dimension_numbers = #tpu.dot_dimension_numbers<[1], [0], [0], [1], [0, 0, 1, 1], [], []>} : vector<36x128xbf16>, vector<128x128xbf16>, vector<36x128xf32> -> vector<36x128xf32>
    %c1_20 = arith.constant 1 : index
    %c0_21 = arith.constant 0 : index
    %c0_22 = arith.constant 0 : index
    %28 = vector.load %arg4[%c1_20, %c0_21, %c0_22] : memref<3x128x128xbf16, #tpu.memory_space<vmem>>, vector<1x128x128xbf16>
    %29 = vector.shape_cast %28 : vector<1x128x128xbf16> to vector<128x128xbf16>
    %cst_23 = arith.constant dense<0.000000e+00> : vector<36x128xf32>
    %30 = tpu.matmul %24, %29, %cst_23 {dimension_numbers = #tpu.dot_dimension_numbers<[1], [0], [0], [1], [0, 0, 1, 1], [], []>} : vector<36x128xbf16>, vector<128x128xbf16>, vector<36x128xf32> -> vector<36x128xf32>
    %c2 = arith.constant 2 : index
    %c0_24 = arith.constant 0 : index
    %c0_25 = arith.constant 0 : index
    %31 = vector.load %arg4[%c2, %c0_24, %c0_25] : memref<3x128x128xbf16, #tpu.memory_space<vmem>>, vector<1x128x128xbf16>
    %32 = vector.shape_cast %31 : vector<1x128x128xbf16> to vector<128x128xbf16>
    %cst_26 = arith.constant dense<0.000000e+00> : vector<36x128xf32>
    %33 = tpu.matmul %24, %32, %cst_26 {dimension_numbers = #tpu.dot_dimension_numbers<[1], [0], [0], [1], [0, 0, 1, 1], [], []>} : vector<36x128xbf16>, vector<128x128xbf16>, vector<36x128xf32> -> vector<36x128xf32>
    %cst_27 = arith.constant 0.000000e+00 : f32
    %34 = vector.broadcast %cst_27 : f32 to vector<1x128xf32>
    %cst_28 = arith.constant 0.000000e+00 : f32
    %35 = vector.broadcast %cst_28 : f32 to vector<1x128xf32>
    %36 = vector.extract_strided_slice %27 {offsets = [0, 0], sizes = [16, 128], strides = [1, 1]} : vector<36x128xf32> to vector<16x128xf32>
    %37 = vector.extract_strided_slice %30 {offsets = [1, 0], sizes = [16, 128], strides = [1, 1]} : vector<36x128xf32> to vector<16x128xf32>
    %38 = arith.addf %36, %37 : vector<16x128xf32>
    %39 = vector.extract_strided_slice %33 {offsets = [2, 0], sizes = [16, 128], strides = [1, 1]} : vector<36x128xf32> to vector<16x128xf32>
    %40 = arith.addf %38, %39 : vector<16x128xf32>
    %c0_29 = arith.constant 0 : index
    %c0_30 = arith.constant 0 : index
    %c0_31 = arith.constant 0 : index
    %41 = vector.load %arg5[%c0_29, %c0_30, %c0_31] : memref<2x16x128xf32, #tpu.memory_space<vmem>>, vector<1x16x128xf32>
    %42 = vector.shape_cast %41 : vector<1x16x128xf32> to vector<16x128xf32>
    %43 = vector.shape_cast %40 : vector<16x128xf32> to vector<1x16x128xf32>
    tpu.vector_store %arg5[%c0_29, %c0_30, %c0_31], %43 {strides = array<i32>} : memref<2x16x128xf32, #tpu.memory_space<vmem>>, vector<1x16x128xf32>,
    %cst_32 = arith.constant dense<0.000000e+00> : vector<128xf32>
    %44 = vector.multi_reduction <add>, %40, %cst_32 [0] : vector<16x128xf32> to vector<128xf32>
    %45 = vector.shape_cast %44 : vector<128xf32> to vector<1x128xf32>
    %46 = arith.addf %34, %45 : vector<1x128xf32>
    %47 = arith.mulf %40, %40 : vector<16x128xf32>
    %cst_33 = arith.constant dense<0.000000e+00> : vector<128xf32>
    %48 = vector.multi_reduction <add>, %47, %cst_33 [0] : vector<16x128xf32> to vector<128xf32>
    %49 = vector.shape_cast %48 : vector<128xf32> to vector<1x128xf32>
    %50 = arith.addf %35, %49 : vector<1x128xf32>
    %51 = vector.extract_strided_slice %27 {offsets = [18, 0], sizes = [16, 128], strides = [1, 1]} : vector<36x128xf32> to vector<16x128xf32>
    %52 = vector.extract_strided_slice %30 {offsets = [19, 0], sizes = [16, 128], strides = [1, 1]} : vector<36x128xf32> to vector<16x128xf32>
    %53 = arith.addf %51, %52 : vector<16x128xf32>
    %54 = vector.extract_strided_slice %33 {offsets = [20, 0], sizes = [16, 128], strides = [1, 1]} : vector<36x128xf32> to vector<16x128xf32>
    %55 = arith.addf %53, %54 : vector<16x128xf32>
    %c1_34 = arith.constant 1 : index
    %c0_35 = arith.constant 0 : index
    %c0_36 = arith.constant 0 : index
    %56 = vector.load %arg5[%c1_34, %c0_35, %c0_36] : memref<2x16x128xf32, #tpu.memory_space<vmem>>, vector<1x16x128xf32>
    %57 = vector.shape_cast %56 : vector<1x16x128xf32> to vector<16x128xf32>
    %58 = vector.shape_cast %55 : vector<16x128xf32> to vector<1x16x128xf32>
    tpu.vector_store %arg5[%c1_34, %c0_35, %c0_36], %58 {strides = array<i32>} : memref<2x16x128xf32, #tpu.memory_space<vmem>>, vector<1x16x128xf32>,
    %cst_37 = arith.constant dense<0.000000e+00> : vector<128xf32>
    %59 = vector.multi_reduction <add>, %55, %cst_37 [0] : vector<16x128xf32> to vector<128xf32>
    %60 = vector.shape_cast %59 : vector<128xf32> to vector<1x128xf32>
    %61 = arith.addf %46, %60 : vector<1x128xf32>
    %62 = arith.mulf %55, %55 : vector<16x128xf32>
    %cst_38 = arith.constant dense<0.000000e+00> : vector<128xf32>
    %63 = vector.multi_reduction <add>, %62, %cst_38 [0] : vector<16x128xf32> to vector<128xf32>
    %64 = vector.shape_cast %63 : vector<128xf32> to vector<1x128xf32>
    %65 = arith.addf %50, %64 : vector<1x128xf32>
    %66 = vector.shape_cast %61 : vector<1x128xf32> to vector<1x1x128xf32>
    %c0_39 = arith.constant 0 : index
    %c0_40 = arith.constant 0 : index
    %c0_41 = arith.constant 0 : index
    %67 = vector.load %arg6[%c0_39, %c0_40, %c0_41] : memref<1x2x128xf32, #tpu.memory_space<vmem>>, vector<1x1x128xf32>
    tpu.vector_store %arg6[%c0_39, %c0_40, %c0_41], %66 {strides = array<i32>} : memref<1x2x128xf32, #tpu.memory_space<vmem>>, vector<1x1x128xf32>,
    %68 = vector.shape_cast %65 : vector<1x128xf32> to vector<1x1x128xf32>
    %c0_42 = arith.constant 0 : index
    %c1_43 = arith.constant 1 : index
    %c0_44 = arith.constant 0 : index
    %69 = vector.load %arg6[%c0_42, %c1_43, %c0_44] : memref<1x2x128xf32, #tpu.memory_space<vmem>>, vector<1x1x128xf32>
    tpu.vector_store %arg6[%c0_42, %c1_43, %c0_44], %68 {strides = array<i32>} : memref<1x2x128xf32, #tpu.memory_space<vmem>>, vector<1x1x128xf32>,
    return
  }
  func.func @transform_0(%arg0: i32) -> (i32, i32, i32) {
    %c0_i32 = arith.constant 0 : i32
    %c0_i32_0 = arith.constant 0 : i32
    %c0_i32_1 = arith.constant 0 : i32
    return %arg0, %c0_i32, %c0_i32_0 : i32, i32, i32
  }
  func.func @transform_1(%arg0: i32) -> (i32, i32) {
    %c0_i32 = arith.constant 0 : i32
    %c0_i32_0 = arith.constant 0 : i32
    %c0_i32_1 = arith.constant 0 : i32
    return %c0_i32, %c0_i32_0 : i32, i32
  }
  func.func @transform_2(%arg0: i32) -> (i32, i32) {
    %c0_i32 = arith.constant 0 : i32
    %c0_i32_0 = arith.constant 0 : i32
    %c0_i32_1 = arith.constant 0 : i32
    return %c0_i32, %c0_i32_0 : i32, i32
  }
  func.func @transform_3(%arg0: i32) -> (i32, i32, i32) {
    %c0_i32 = arith.constant 0 : i32
    %c0_i32_0 = arith.constant 0 : i32
    %c0_i32_1 = arith.constant 0 : i32
    %c0_i32_2 = arith.constant 0 : i32
    return %c0_i32, %c0_i32_0, %c0_i32_1 : i32, i32, i32
  }
  func.func @transform_4(%arg0: i32) -> (i32, i32, i32) {
    %c0_i32 = arith.constant 0 : i32
    %c0_i32_0 = arith.constant 0 : i32
    %c0_i32_1 = arith.constant 0 : i32
    return %arg0, %c0_i32, %c0_i32_0 : i32, i32, i32
  }
  func.func @transform_5(%arg0: i32) -> (i32, i32, i32) {
    %c0_i32 = arith.constant 0 : i32
    %c0_i32_0 = arith.constant 0 : i32
    %c0_i32_1 = arith.constant 0 : i32
    return %arg0, %c0_i32, %c0_i32_0 : i32, i32, i32
  }
}

</mosaic_0001>

<bundles_post_ra>
// kernel: tile.28
= control target key start
LH: loop header
LB: loop body
LE: loop exit
PB: predicated region body
PF: predicated region fallthrough
CT: control target
= control target key end

     0   :  { %s28_s0 = inlined_call_operand.vmem [shape: f32[8], index: 0, kind: input, shape index: {}]   ;;  %s29_s1 = inlined_call_operand.vmem [shape: f32[16,8], index: 1, kind: output, shape index: {}]  }
   0x1   :  { %v4_v0 = vld [vmem:[%s28_s0] ss:$0 sm:$0xff] }
   0x2   :  { %5 = vst [vmem:[%s29_s1] sm:$0xff] %v4_v0  ;;  %8 = vst [vmem:[%s29_s1 + $0x8] sm:$0xff] %v4_v0 }

// kernel: tile.29
= control target key start
LH: loop header
LB: loop body
LE: loop exit
PB: predicated region body
PF: predicated region fallthrough
CT: control target
= control target key end

     0   :  { %s131_s10 = smov 120   ;;  %s132_s11 = smov 104   ;;  %vm3_vm0 = vcmask 64512   ;;  %vm9_vm1 = vcmask 1048512   ;;  %vm15_vm2 = vcmask 982912   ;;  %vm21_vm3 = vcmask 917312   ;;  %s207_s0 = inlined_call_operand.vmem [shape: f32[16,8], index: 0, kind: input, shape index: {}]   ;;  %s208_s1 = inlined_call_operand.vmem [shape: f32[1,128], index: 1, kind: output, shape index: {}]  }
   0x1   :  { %v101_v0 = vld [vmem:[%s207_s0 + $0xf] sm:$0x1]   ;;  %v103_v1 = vld [vmem:[%s207_s0 + $0xd] sm:$0x1]   ;;  %v102_v2 = vld [vmem:[%s207_s0 + $0xe] sm:$0x1]  }
   0x2   :  { %7 = vrot.lane.b32.xlu0 %v101_v0, %s131_s10  ;;  %19 = vrot.lane.b32.xlu1 %v103_v1, %s132_s11  ;;  %v104_v3 = vld [vmem:[%s207_s0 + $0xc] sm:$0x1]   ;;  %s133_s16 = smov 112   ;;  %s134_s17 = smov 96   ;;  %v105_v4 = vld [vmem:[%s207_s0 + $0xb] sm:$0x1]  }
   0x3   :  { %v106_v5 = vld [vmem:[%s207_s0 + $0xa] sm:$0x1]   ;;  %v2_v6 = vld [vmem:[%s207_s0] sm:$0x1]   ;;  %s135_s24 = smov 88   ;;  %s136_s25 = smov 80  }
   0x4   :  { %4 = vst.msk [vmem:[#allocation0] sm:$0x1] %vm3_vm0, %v2_v6   ;;  %v107_v7 = vld [vmem:[%s207_s0 + $0x9] sm:$0x1]   ;;  %v108_v8 = vld [vmem:[%s207_s0 + $0x8] sm:$0x1]  }
   0x5   :  { %s137_s30 = smov 72   ;;  %s138_s2 = smov 64   ;;  %v109_v9 = vld [vmem:[%s207_s0 + $0x7] sm:$0x1]   ;;  %v110_v10 = vld [vmem:[%s207_s0 + $0x6] sm:$0x1]  }
   0x6   :  { %13 = vrot.lane.b32.xlu0 %v102_v2, %s133_s16  ;;  %25 = vrot.lane.b32.xlu1 %v104_v3, %s134_s17  ;;  %s139_s7 = smov 56   ;;  %s140_s8 = smov 48   ;;  %v111_v11 = vld [vmem:[%s207_s0 + $0x5] sm:$0x1]   ;;  %v112_v12 = vld [vmem:[%s207_s0 + $0x4] sm:$0x1]  }
   0x7   :  { %s141_s13 = smov 40   ;;  %s142_s14 = smov 32   ;;  %v113_v13 = vld [vmem:[%s207_s0 + $0x3] sm:$0x1]   ;;  %v114_v14 = vld [vmem:[%s207_s0 + $0x2] sm:$0x1]  }
   0x8   :  { %s143_s19 = smov 24   ;;  %s144_s20 = smov 16   ;;  %v115_v15 = vld [vmem:[%s207_s0 + $0x1] sm:$0x1]   ;;  %vm27_vm4 = vcmask 851712   ;;  %vm33_vm5 = vcmask 786112  }
   0x9   :  { %s145_s0 = smov 8   ;;  %vm39_vm6 = vcmask 720512   ;;  %vm45_vm7 = vcmask 654912   ;;  %vm51_vm8 = vcmask 589312   ;;  %vm57_vm9 = vcmask 523712  }
   0xa   :  { %31 = vrot.lane.b32.xlu0 %v105_v4, %s135_s24  ;;  %37 = vrot.lane.b32.xlu1 %v106_v5, %s136_s25  ;;  %vm63_vm10 = vcmask 458112   ;;  %vm69_vm11 = vcmask 392512   ;;  %vm75_vm12 = vcmask 326912   ;;  %vm81_vm13 = vcmask 261312  }
   0xb   :  { %vm87_vm14 = vcmask 195712   ;;  %vm93_vm15 = vcmask 130112  }
   0xe   :  { %43 = vrot.lane.b32.xlu0 %v107_v7, %s137_s30  ;;  %49 = vrot.lane.b32.xlu1 %v108_v8, %s138_s2 }
  0x12   :  { %55 = vrot.lane.b32.xlu0 %v109_v9, %s139_s7  ;;  %61 = vrot.lane.b32.xlu1 %v110_v10, %s140_s8 }
  0x16   :  { %67 = vrot.lane.b32.xlu0 %v111_v11, %s141_s13  ;;  %73 = vrot.lane.b32.xlu1 %v112_v12, %s142_s14 }
  0x1a   :  { %79 = vrot.lane.b32.xlu0 %v113_v13, %s143_s19  ;;  %85 = vrot.lane.b32.xlu1 %v114_v14, %s144_s20 }
  0x1e   :  { %91 = vrot.lane.b32.xlu0 %v115_v15, %s145_s0 }
  0x74   :  { %v8_v16 = vpop.permute.xlu0 %7   ;;  %v20_v17 = vpop.permute.xlu1 %19  }
  0x75   :  { %10 = vst.msk [vmem:[#allocation0] sm:$0x1] %vm9_vm1, %v8_v16  }
  0x78   :  { %v14_v18 = vpop.permute.xlu0 %13   ;;  %v26_v19 = vpop.permute.xlu1 %25  }
  0x79   :  { %16 = vst.msk [vmem:[#allocation0] sm:$0x1] %vm15_vm2, %v14_v18  }
  0x7a   :  { %22 = vst.msk [vmem:[#allocation0] sm:$0x1] %vm21_vm3, %v20_v17  }
  0x7b   :  { %28 = vst.msk [vmem:[#allocation0] sm:$0x1] %vm27_vm4, %v26_v19  }
  0x7c   :  { %v32_v20 = vpop.permute.xlu0 %31   ;;  %v38_v21 = vpop.permute.xlu1 %37  }
  0x7d   :  { %34 = vst.msk [vmem:[#allocation0] sm:$0x1] %vm33_vm5, %v32_v20  }
  0x7e   :  { %40 = vst.msk [vmem:[#allocation0] sm:$0x1] %vm39_vm6, %v38_v21  }
  0x80   :  { %v44_v22 = vpop.permute.xlu0 %43   ;;  %v50_v23 = vpop.permute.xlu1 %49  }
  0x81   :  { %46 = vst.msk [vmem:[#allocation0] sm:$0x1] %vm45_vm7, %v44_v22  }
  0x82   :  { %52 = vst.msk [vmem:[#allocation0] sm:$0x1] %vm51_vm8, %v50_v23  }
  0x84   :  { %v56_v24 = vpop.permute.xlu0 %55   ;;  %v62_v25 = vpop.permute.xlu1 %61  }
  0x85   :  { %58 = vst.msk [vmem:[#allocation0] sm:$0x1] %vm57_vm9, %v56_v24  }
  0x86   :  { %64 = vst.msk [vmem:[#allocation0] sm:$0x1] %vm63_vm10, %v62_v25  }
  0x88   :  { %v68_v26 = vpop.permute.xlu0 %67   ;;  %v74_v27 = vpop.permute.xlu1 %73  }
  0x89   :  { %70 = vst.msk [vmem:[#allocation0] sm:$0x1] %vm69_vm11, %v68_v26  }
  0x8a   :  { %76 = vst.msk [vmem:[#allocation0] sm:$0x1] %vm75_vm12, %v74_v27  }
  0x8c   :  { %v80_v28 = vpop.permute.xlu0 %79   ;;  %v86_v29 = vpop.permute.xlu1 %85  }
  0x8d   :  { %82 = vst.msk [vmem:[#allocation0] sm:$0x1] %vm81_vm13, %v80_v28  }
  0x8e   :  { %88 = vst.msk [vmem:[#allocation0] sm:$0x1] %vm87_vm14, %v86_v29  }
  0x90   :  { %v92_v30 = vpop.permute.xlu0 %91  }
  0x91   :  { %94 = vst.msk [vmem:[#allocation0] sm:$0x1] %vm93_vm15, %v92_v30  }
  0x98   :  { %v98_v31 = vld [vmem:[#allocation0] sm:$0x1] }
  0x99   :  { %100 = vst [vmem:[%s208_s1] sm:$0x1] %v98_v31 }

// kernel: convolution_forward.2
= control target key start
LH: loop header
LB: loop body
LE: loop exit
PB: predicated region body
PF: predicated region fallthrough
CT: control target
= control target key end

     0   :  { %v737_v0 = vmov 0.0   ;;  %vm20_vm0 = vcmask 516096   ;;  %vm738_vm1 = vmmov 0   ;;  %vm21_vm2 = vsmask.f32 256  ;;  %s927_s1 = inlined_call_operand.vmem [shape: bf16[3,64,128], index: 1, kind: input, shape index: {}]   ;;  %s928_s0 = inlined_call_operand.vmem [shape: f32[2,16,64], index: 0, kind: input, shape index: {}]   ;;  %s929_s2 = inlined_call_operand.vmem [shape: bf16[2,16,128], index: 2, kind: output, shape index: {0}]   ;;  %s930_s3 = inlined_call_operand.vmem [shape: f32[1,2,128], index: 3, kind: output, shape index: {1}]  }
   0x1   :  { %652 = vmatprep.subr.bf16.mxu0 %v737_v0  ;;  %v722_v1 = vld [vmem:[%s927_s1] sm:$0xff]   ;;  %712 = vmatprep.subr.bf16.mxu1 %v737_v0  ;;  %v723_v2 = vld [vmem:[%s927_s1 + $0x8] sm:$0xff]   ;;  %vm781_vm3 = vmand %vm20_vm0, %vm21_vm2  ;;  %vm53_vm4 = vcmask 519168   ;;  %vm31_vm5 = vsmask.f32 4368  ;;  %vm68_vm6 = vcmask 517121  }
   0x2   :  { %660 = vmatprep.mubr.msk.bf16.mxu0 %vm738_vm1, %v737_v0  ;;  %668 = vmatprep.mubr.msk.bf16.mxu1 %vm738_vm1, %v737_v0  ;;  %v14_v3 = vld [vmem:[%s928_s0] sm:$0xff]  ;;  %v15_v4 = vld [vmem:[%s928_s0 + $0x8] sm:$0xff]  ;;  %v724_v6 = vld [vmem:[%s927_s1 + $0x10] sm:$0xff]   ;;  %vm54_vm7 = vsmask.f32 7938  ;;  %vm110_vm11 = vcmask 517120  }
   0x3   :  { %653 = vmatpush3.bf16.msra.mxu0 %v722_v1  ;;  %716 = vmatpush3.bf16.msra.mxu1 %v722_v1  ;;  %v23_v7 = vld [vmem:[#allocation2] sm:$0x1]  ;;  %v617_v8 = vpack.c.bf16 %v14_v3, %v14_v3  ;;  %v618_v9 = vpack.c.bf16 %v15_v4, %v15_v4  ;;  %v725_v15 = vld [vmem:[%s927_s1 + $0x18] sm:$0xff]   ;;  %vm69_vm8 = vsmask.f32 1280  ;;  %vm800_vm9 = vmor %vm21_vm2, %vm31_vm5  ;;  %vm103_vm2 = vcmask 519169  }
   0x4   :  { %654 = vmatprep.subr.bf16.mxu0 %v737_v0  ;;  %713 = vmatprep.subr.bf16.mxu1 %v737_v0  ;;  %v24_v10 = vsel %vm781_vm3, 0, %v23_v7  ;;  %v17_v16 = vld [vmem:[%s928_s0 + $0x18] sm:$0xff]  ;;  %vm104_vm10 = vsmask.f32 7942  ;;  %v16_v21 = vld [vmem:[%s928_s0 + $0x10] sm:$0xff]  ;;  %vm810_vm12 = vmand %vm53_vm4, %vm54_vm7 }
   0x5   :  { %25 = vst [vmem:[#allocation2] sm:$0x1] %v24_v10  ;;  %v34_v11 = vshrl.u32 %v617_v8, 16  ;;  %v37_v12 = vshll.u32 %v617_v8, 16  ;;  %v42_v13 = vshrl.u32 %v618_v9, 16  ;;  %v45_v14 = vshll.u32 %v618_v9, 16  ;;  %vm70_vm13 = vmand %vm68_vm6, %vm69_vm8 }
   0x6   :  { %v620_v19 = vpack.c.bf16 %v17_v16, %v17_v16  ;;  %v61_v27 = vld [vmem:[#allocation2 + $0x8] sm:$0x1]  ;;  %v71_v28 = vld [vmem:[#allocation2 + $0x8] sm:$0x2]  ;;  %v619_v31 = vpack.c.bf16 %v16_v21, %v16_v21  ;;  %vm79_vm14 = vsmask.f32 5392  ;;  %vm111_vm15 = vmand %vm110_vm11, %vm69_vm8 }
   0x7   :  { %655 = vmatpush3.bf16.msra.mxu0 %v723_v2  ;;  %717 = vmatpush3.bf16.msra.mxu1 %v723_v2  ;;  %v36_v17 = vrot.slane %v34_v11, 7  ;;  %v44_v18 = vrot.slane %v42_v13, 7  ;;  %v72_v34 = vsel %vm70_vm13, 0, %v71_v28  ;;  %v112_v41 = vld [vmem:[#allocation2 + $0x10] sm:$0x3]  ;;  %vm105_vm5 = vmand %vm103_vm2, %vm104_vm10  ;;  %v727_v50 = vld [vmem:[%s927_s1 + $0x40] sm:$0xff]  }
   0x8   :  { %656 = vmatprep.subr.bf16.mxu0 %v737_v0  ;;  %714 = vmatprep.subr.bf16.mxu1 %v737_v0  ;;  %v91_v26 = vshrl.u32 %v620_v19, 16  ;;  %v94_v29 = vshll.u32 %v620_v19, 16  ;;  %73 = vst [vmem:[#allocation2 + $0x8] sm:$0x2] %v72_v34  ;;  %v82_v38 = vshrl.u32 %v619_v31, 16  ;;  %v85_v39 = vshll.u32 %v619_v31, 16 }
   0x9   :  { %v39_v22 = vor.u32 %v37_v12, %v36_v17  ;;  %v40_v23 = vrot.slane %v36_v17, 4  ;;  %v47_v24 = vor.u32 %v45_v14, %v44_v18  ;;  %v49_v30 = vrot.slane %v44_v18, 4  ;;  %v728_v56 = vld [vmem:[%s927_s1 + $0x48] sm:$0xff]   ;;  %v732_v59 = vld [vmem:[%s927_s1 + $0x50] sm:$0xff]   ;;  %v734_v61 = vld [vmem:[%s927_s1 + $0x58] sm:$0xff]  }
   0xa   :  { %v93_v33 = vrot.slane %v91_v26, 6  ;;  %v96_v36 = vrot.slane %v94_v29, 7  ;;  %v84_v43 = vrot.slane %v82_v38, 6  ;;  %v87_v44 = vrot.slane %v85_v39, 7  ;;  %v730_v62 = vld [vmem:[%s927_s1 + $0x20] sm:$0xff]   ;;  %v733_v1 = vld [vmem:[%s927_s1 + $0x28] sm:$0xff]  }
   0xb   :  { %657 = vmatpush3.bf16.msra.mxu0 %v724_v6  ;;  %718 = vmatpush3.bf16.msra.mxu1 %v724_v6  ;;  %v48_v32 = vsel %vm800_vm9, %v40_v23, %v47_v24  ;;  %v62_v37 = vsel %vm781_vm3, %v49_v30, %v61_v27  ;;  %vm80_vm3 = vmor %vm69_vm8, %vm79_vm14  ;;  %v735_v2 = vld [vmem:[%s927_s1 + $0x30] sm:$0xff]   ;;  %v736_v3 = vld [vmem:[%s927_s1 + $0x38] sm:$0xff]  }
   0xc   :  { %658 = vmatprep.subr.bf16.mxu0 %v737_v0  ;;  %715 = vmatprep.subr.bf16.mxu1 %v737_v0  ;;  %v56_v35 = vld [vmem:[#allocation2] sm:$0xf]  ;;  %60 = vst.msk [vmem:[#allocation2 + $0x4] sm:$0xf] %vm53_vm4, %v48_v32  ;;  %63 = vst [vmem:[#allocation2 + $0x8] sm:$0x1] %v62_v37  ;;  %v97_v42 = vor.u32 %v96_v36, %v93_v33  ;;  %v88_v46 = vor.u32 %v87_v44, %v84_v43 }
   0xd   :  { %v57_v40 = vsel %vm810_vm12, %v39_v22, %v56_v35  ;;  %vm64_vm9 = vmand %vm20_vm0, %vm54_vm7  ;;  %vm169_vm12 = vcmask 523264   ;;  %vm502_vm7 = vcmask 1046532  }
   0xe   :  { %58 = vst [vmem:[#allocation2] sm:$0xf] %v57_v40  ;;  %v99_v45 = vrot.slane %v97_v42, 4  ;;  %v89_v48 = vrot.slane %v88_v46, 4  ;;  %vm115_vm0 = vmand %vm68_vm6, %vm104_vm10  ;;  %vm501_vm6 = vcmask 1042432  }
   0xf   :  { %659 = vmatpush3.bf16.msra.mxu0 %v725_v15  ;;  %719 = vmatpush3.bf16.msra.mxu1 %v725_v15  ;;  %v106_v49 = vld [vmem:[#allocation2 + $0x8] sm:$0xe]  ;;  %vm903_vm8 = vmor %vm501_vm6, %vm502_vm7 }
  0x10   :  { %692 = vmatprep.subr.bf16.mxu0 %v737_v0  ;;  %672 = vmatprep.subr.bf16.mxu1 %v737_v0  ;;  %v113_v47 = vsel %vm111_vm15, %v99_v45, %v112_v41  ;;  %v98_v52 = vsel %vm80_vm3, %v89_v48, %v97_v42  ;;  %v107_v53 = vsel %vm105_vm5, %v88_v46, %v106_v49 }
  0x11   :  { %114 = vst [vmem:[#allocation2 + $0x10] sm:$0x3] %v113_v47  ;;  %108 = vst [vmem:[#allocation2 + $0x8] sm:$0xe] %v107_v53 }
  0x12   :  { %109 = vst.msk [vmem:[#allocation2 + $0xc] sm:$0xf] %vm53_vm4, %v98_v52  ;;  %vm416_vm4 = vcmask 1046528  }
  0x13   :  { %v65_v51 = vld [vmem:[#allocation2 + $0x8] sm:$0x1] }
  0x14   :  { %v66_v55 = vsel %vm64_vm9, 0, %v65_v51 }
  0x15   :  { %v726_v54 = vld [vmem:[#allocation2] sm:$0xff]   ;;  %67 = vst [vmem:[#allocation2 + $0x8] sm:$0x1] %v66_v55 }
  0x16   :  { %661 = vmatmul.mubr.msk.bf16.vlgmr.msra.gmra.mrb[0].mxu0 %vm169_vm12, %v726_v54 }
  0x17   :  { %693 = vmatpush3.bf16.msra.mxu0 %v727_v50  ;;  %664 = vmatprep.mubr.msk.bf16.mxu0 %vm738_vm1, %v737_v0 }
  0x18   :  { %694 = vmatprep.subr.bf16.mxu0 %v737_v0  ;;  %v116_v57 = vld [vmem:[#allocation2 + $0x10] sm:$0x2]  ;;  %v729_v63 = vld [vmem:[#allocation2 + $0x10] ss:$0 sps:$4 sm:$0x33]  }
  0x19   :  { %v117_v58 = vsel %vm115_vm0, 0, %v116_v57  ;;  %669 = vmatmul.mubr.msk.bf16.vlgmr.msra.gmra.mrb[0].mxu1 %vm169_vm12, %v729_v63 }
  0x1a   :  { %118 = vst [vmem:[#allocation2 + $0x10] sm:$0x2] %v117_v58  ;;  %673 = vmatpush3.bf16.msra.mxu1 %v730_v62  ;;  %680 = vmatprep.mubr.msk.bf16.mxu1 %vm738_vm1, %v737_v0 }
  0x1b   :  { %695 = vmatpush3.bf16.msra.mxu0 %v728_v56  ;;  %674 = vmatprep.subr.bf16.mxu1 %v737_v0 }
  0x1c   :  { %v731_v60 = vld [vmem:[#allocation2 + $0x8] sm:$0xff]   ;;  %696 = vmatprep.subr.bf16.mxu0 %v737_v0 }
  0x1e   :  { %665 = vmatmul.mubr.msk.bf16.gmra.mrb[4].mxu0 %vm169_vm12, %v731_v60  ;;  %675 = vmatpush3.bf16.msra.mxu1 %v733_v1 }
  0x1f   :  { %697 = vmatpush3.bf16.msra.mxu0 %v732_v59  ;;  %700 = vmatprep.mubr.msk.bf16.mxu0 %vm738_vm1, %v737_v0 }
  0x20   :  { %698 = vmatprep.subr.bf16.mxu0 %v737_v0  ;;  %676 = vmatprep.subr.bf16.mxu1 %v737_v0 }
  0x22   :  { %677 = vmatpush3.bf16.msra.mxu1 %v735_v2 }
  0x23   :  { %699 = vmatpush3.bf16.msra.mxu0 %v734_v61  ;;  %678 = vmatprep.subr.bf16.mxu1 %v737_v0 }
  0x26   :  { %701 = vmatmul.mubr.msk.bf16.vlgmr.msra.gmra.mrb[8].mxu0 %vm169_vm12, %v726_v54  ;;  %679 = vmatpush3.bf16.msra.mxu1 %v736_v3 }
  0x27   :  { %704 = vmatprep.mubr.msk.bf16.mxu0 %vm738_vm1, %v737_v0 }
  0x29   :  { %681 = vmatmul.mubr.msk.bf16.vlgmr.msra.gmra.mrb[4].mxu1 %vm169_vm12, %v726_v54 }
  0x2a   :  { %684 = vmatprep.mubr.msk.bf16.mxu1 %vm738_vm1, %v737_v0 }
  0x2e   :  { %705 = vmatmul.mubr.msk.bf16.gmra.mrb[12].mxu0 %vm169_vm12, %v731_v60 }
  0x2f   :  { %708 = vmatprep.mubr.msk.bf16.mxu0 %vm738_vm1, %v737_v0 }
  0x31   :  { %685 = vmatmul.mubr.msk.bf16.gmra.mrb[8].mxu1 %vm169_vm12, %v731_v60 }
  0x32   :  { %688 = vmatprep.mubr.msk.bf16.mxu1 %vm738_vm1, %v737_v0  ;;  %vm429_vm1 = vcmask 1045504  }
  0x36   :  { %709 = vmatmul.mubr.msk.bf16.gmra.mrb[16].mxu0 %vm169_vm12, %v729_v63 }
  0x39   :  { %689 = vmatmul.mubr.msk.bf16.gmra.mrb[12].mxu1 %vm169_vm12, %v729_v63 }
  0xe9   :  { %v213_v4 = vpop.f32.mrb[0].mxu0 }
  0xea   :  { %v662_v5 = vpop.f32.mrb[1].mxu0 }
  0xeb   :  { %v216_v6 = vpop.f32.mrb[2].mxu0 }
  0xec   :  { %v663_v7 = vpop.f32.mrb[3].mxu0  ;;  %v229_v12 = vpop.f32.mrb[0].mxu1 }
  0xed   :  { %v670_v13 = vpop.f32.mrb[1].mxu1 }
  0xee   :  { %v232_v14 = vpop.f32.mrb[2].mxu1 }
  0xef   :  { %v671_v16 = vpop.f32.mrb[3].mxu1 }
  0xf1   :  { %v221_v8 = vpop.f32.mrb[4].mxu0 }
  0xf2   :  { %v666_v9 = vpop.f32.mrb[5].mxu0 }
  0xf3   :  { %v889_v10 = vpop.f32.mrb[6].mxu0 }
  0xf4   :  { %v667_v11 = vpop.f32.mrb[7].mxu0 }
  0xf9   :  { %v391_v15 = vpop.f32.mrb[8].mxu0 }
  0xfa   :  { %v430_v17 = vrot.slane %v391_v15, 2  ;;  %v702_v18 = vpop.f32.mrb[9].mxu0 }
  0xfb   :  { %v394_v19 = vpop.f32.mrb[10].mxu0 }
  0xfc   :  { %v431_v0 = vrot.slane %v394_v19, 2  ;;  %v703_v20 = vpop.f32.mrb[11].mxu0  ;;  %v302_v30 = vpop.f32.mrb[4].mxu1 }
  0xfd   :  { %v682_v31 = vpop.f32.mrb[5].mxu1  ;;  %v417_v34 = vrot.slane %v302_v30, 1 }
  0xfe   :  { %v432_v21 = vsel %vm429_vm1, %v430_v17, %v431_v0  ;;  %v305_v32 = vpop.f32.mrb[6].mxu1 }
  0xff   :  { %v418_v35 = vrot.slane %v305_v32, 1  ;;  %v683_v36 = vpop.f32.mrb[7].mxu1 }
 0x101   :  { %v399_v22 = vpop.f32.mrb[12].mxu0  ;;  %v419_v40 = vsel %vm416_vm4, %v417_v34, %v418_v35 }
 0x102   :  { %v433_v23 = vrot.slane %v399_v22, 2  ;;  %v706_v24 = vpop.f32.mrb[13].mxu0  ;;  %v424_v43 = vadd.f32 %v419_v40, %v213_v4 }
 0x103   :  { %v402_v25 = vpop.f32.mrb[14].mxu0 }
 0x104   :  { %v434_v26 = vsel %vm429_vm1, %v431_v0, %v433_v23  ;;  %v481_v27 = vrot.slane %v402_v25, 2  ;;  %v707_v28 = vpop.f32.mrb[15].mxu0  ;;  %v437_v44 = vadd.f32 %v432_v21, %v424_v43  ;;  %v310_v45 = vpop.f32.mrb[8].mxu1 }
 0x105   :  { %v420_v46 = vrot.slane %v310_v45, 1  ;;  %v686_v47 = vpop.f32.mrb[9].mxu1 }
 0x106   :  { %v482_v29 = vsel %vm429_vm1, %v433_v23, %v481_v27  ;;  %v313_v48 = vpop.f32.mrb[10].mxu1  ;;  %v457_v56 = vmul.f32 %v437_v44, %v437_v44 }
 0x107   :  { %v421_v49 = vsel %vm416_vm4, %v418_v35, %v420_v46  ;;  %v469_v50 = vrot.slane %v313_v48, 1  ;;  %v687_v51 = vpop.f32.mrb[11].mxu1 }
 0x108   :  { %v425_v52 = vadd.f32 %v421_v49, %v216_v6 }
 0x109   :  { %v407_v33 = vpop.f32.mrb[16].mxu0  ;;  %v470_v53 = vsel %vm416_vm4, %v420_v46, %v469_v50 }
 0x10a   :  { %v483_v37 = vrot.slane %v407_v33, 2  ;;  %v710_v38 = vpop.f32.mrb[17].mxu0  ;;  %v438_v54 = vadd.f32 %v434_v26, %v425_v52  ;;  %v476_v55 = vadd.f32 %v470_v53, %v221_v8 }
 0x10b   :  { %v410_v39 = vpop.f32.mrb[18].mxu0 }
 0x10c   :  { %v484_v41 = vsel %vm429_vm1, %v481_v27, %v483_v37  ;;  %v711_v42 = vpop.f32.mrb[19].mxu0  ;;  %v629_v57 = vpack.c.bf16 %v438_v54, %v437_v44  ;;  %v449_v58 = vadd.f32 %v438_v54, %v437_v44  ;;  %v458_v59 = vmul.f32 %v438_v54, %v438_v54  ;;  %v318_v61 = vpop.f32.mrb[12].mxu1 }
 0x10d   :  { %v488_v60 = vadd.f32 %v482_v29, %v476_v55  ;;  %v471_v62 = vrot.slane %v318_v61, 1  ;;  %v690_v63 = vpop.f32.mrb[13].mxu1 }
 0x10e   :  { %630 = vst [vmem:[%s929_s2] sm:$0xff] %v629_v57   ;;  %v459_v1 = vadd.f32 %v458_v59, %v457_v56  ;;  %v321_v2 = vpop.f32.mrb[14].mxu1  ;;  %v450_v7 = vrot.slane %v449_v58, 4 }
 0x10f   :  { %v472_v3 = vsel %vm416_vm4, %v469_v50, %v471_v62  ;;  %v478_v4 = vadd.f32 %v471_v62, %v229_v12  ;;  %v691_v5 = vpop.f32.mrb[15].mxu1  ;;  %v623_v11 = vpack.c.bf16 %v488_v60, %v488_v60  ;;  %v534_v14 = vmul.f32 %v488_v60, %v488_v60 }
 0x110   :  { %v477_v6 = vadd.f32 %v472_v3, %v889_v10  ;;  %v460_v9 = vrot.slane %v459_v1, 4  ;;  %v519_v17 = vrot.slane %v488_v60, 2  ;;  %v451_v20 = vadd.f32 %v450_v7, %v449_v58 }
 0x111   :  { %v490_v8 = vadd.f32 %v483_v37, %v478_v4  ;;  %v614_v23 = vrot.slane %v623_v11, 9  ;;  %v540_v26 = vrot.slane %v534_v14, 2 }
 0x112   :  { %v489_v13 = vadd.f32 %v484_v41, %v477_v6  ;;  %v461_v22 = vadd.f32 %v460_v9, %v459_v1  ;;  %v452_v32 = vrot.slane %v451_v20, 2 }
 0x113   :  { %v522_v15 = vrot.slane %v490_v8, 2  ;;  %v536_v16 = vmul.f32 %v490_v8, %v490_v8  ;;  %v625_v19 = vpack.c.bf16 %v490_v8, %v490_v8 }
 0x114   :  { %v624_v18 = vpack.c.bf16 %v489_v13, %v489_v13  ;;  %v520_v0 = vrot.slane %v489_v13, 2  ;;  %v535_v10 = vmul.f32 %v489_v13, %v489_v13  ;;  %v462_v36 = vrot.slane %v461_v22, 2 }
 0x115   :  { %v543_v21 = vrot.slane %v536_v16, 2  ;;  %v509_v31 = vrot.slane %v625_v19, 5  ;;  %v453_v41 = vadd.f32 %v452_v32, %v451_v20 }
 0x116   :  { %v506_v24 = vrot.slane %v624_v18, 5  ;;  %v521_v25 = vsel %vm429_vm1, %v519_v17, %v520_v0  ;;  %v523_v27 = vsel %vm429_vm1, %v520_v0, %v522_v15  ;;  %v541_v28 = vrot.slane %v535_v10, 2 }
 0x117   :  { %v526_v33 = vadd.f32 %v523_v27, %v521_v25  ;;  %v463_v43 = vadd.f32 %v462_v36, %v461_v22  ;;  %v454_v47 = vrot.slane %v453_v41, 1 }
 0x118   :  { %v507_v29 = vsel %vm903_vm8, %v614_v23, %v506_v24  ;;  %v508_v30 = vrot.slane %v506_v24, 4  ;;  %v542_v34 = vsel %vm429_vm1, %v540_v26, %v541_v28  ;;  %v544_v35 = vsel %vm429_vm1, %v541_v28, %v543_v21 }
 0x119   :  { %615 = vst [vmem:[%s929_s2 + $0x8] sm:$0xf] %v507_v29  ;;  %v547_v38 = vadd.f32 %v544_v35, %v542_v34  ;;  %v527_v39 = vrot.slane %v526_v33, 4  ;;  %v464_v49 = vrot.slane %v463_v43, 1  ;;  %v455_v53 = vadd.f32 %v454_v47, %v453_v41 }
 0x11a   :  { %v510_v37 = vsel %vm903_vm8, %v508_v30, %v509_v31 }
 0x11b   :  { %616 = vst [vmem:[%s929_s2 + $0xc] sm:$0xf] %v510_v37  ;;  %v548_v40 = vrot.slane %v547_v38, 4  ;;  %v528_v42 = vadd.f32 %v527_v39, %v526_v33  ;;  %v465_v55 = vadd.f32 %v464_v49, %v463_v43 }
 0x11d   :  { %v549_v44 = vadd.f32 %v548_v40, %v547_v38  ;;  %v529_v45 = vrot.slane %v528_v42, 2 }
 0x11f   :  { %v550_v46 = vrot.slane %v549_v44, 2  ;;  %v530_v48 = vadd.f32 %v529_v45, %v528_v42 }
 0x121   :  { %v551_v50 = vadd.f32 %v550_v46, %v549_v44  ;;  %v531_v51 = vrot.slane %v530_v48, 1 }
 0x123   :  { %v552_v52 = vrot.slane %v551_v50, 1  ;;  %v532_v54 = vadd.f32 %v531_v51, %v530_v48 }
 0x125   :  { %v553_v56 = vadd.f32 %v552_v52, %v551_v50  ;;  %v533_v57 = vadd.f32 %v532_v54, %v455_v53 }
 0x127   :  { %v554_v58 = vadd.f32 %v553_v56, %v465_v55  ;;  %555 = vst [vmem:[%s930_s3] sm:$0x1] %v533_v57 }
 0x129   :  { %556 = vst [vmem:[%s930_s3 + $0x1] sm:$0x1] %v554_v58 }

// kernel: convolution_forward.3
= control target key start
LH: loop header
LB: loop body
LE: loop exit
PB: predicated region body
PF: predicated region fallthrough
CT: control target
= control target key end

     0   :  { %v903_v0 = vmov 0.0   ;;  %vm904_vm0 = vmmov 0   ;;  %vm57_vm1 = vsmask.f32 256  ;;  %vm56_vm2 = vcmask 1040384   ;;  %s1145_s3 = inlined_call_operand.vmem [shape: bf16[3,128,128], index: 3, kind: input, shape index: {}]   ;;  %s1146_s0 = inlined_call_operand.vmem [shape: bf16[2,16,128], index: 0, kind: input, shape index: {}]   ;;  %s1147_s1 = inlined_call_operand.vmem [shape: f32[1,128], index: 1, kind: input, shape index: {}]   ;;  %s1148_s2 = inlined_call_operand.vmem [shape: f32[1,128], index: 2, kind: input, shape index: {}]   ;;  %s1149_s4 = inlined_call_operand.vmem [shape: f32[2,16,128], index: 4, kind: output, shape index: {0}]   ;;  %s1150_s5 = inlined_call_operand.vmem [shape: f32[1,2,128], index: 5, kind: output, shape index: {1}]  }
   0x1   :  { %774 = vmatprep.subr.bf16.mxu0 %v903_v0  ;;  %802 = vmatprep.subr.bf16.mxu1 %v903_v0  ;;  %v876_v1 = vld [vmem:[%s1145_s3] sm:$0xff]   ;;  %v878_v3 = vld [vmem:[%s1145_s3 + $0x8] sm:$0xff]   ;;  %v880_v5 = vld [vmem:[%s1145_s3 + $0x10] sm:$0xff]   ;;  %vm103_vm4 = vcmask 1041409   ;;  %vm104_vm5 = vsmask.f32 1280 }
   0x2   :  { %v877_v2 = vld [vmem:[%s1145_s3 + $0x40] sm:$0xff]   ;;  %818 = vmatprep.mubr.msk.bf16.mxu1 %vm904_vm0, %v903_v0  ;;  %790 = vmatprep.mubr.msk.bf16.mxu0 %vm904_vm0, %v903_v0  ;;  %v879_v4 = vld [vmem:[%s1145_s3 + $0x48] sm:$0xff]   ;;  %v881_v6 = vld [vmem:[%s1145_s3 + $0x50] sm:$0xff]   ;;  %vm89_vm6 = vcmask 1043456   ;;  %vm67_vm8 = vsmask.f32 4368 }
   0x3   :  { %775 = vmatpush3.bf16.msra.mxu0 %v876_v1  ;;  %803 = vmatpush3.bf16.msra.mxu1 %v877_v2  ;;  %v882_v7 = vld [vmem:[%s1145_s3 + $0x18] sm:$0xff]   ;;  %v884_v9 = vld [vmem:[%s1145_s3 + $0x20] sm:$0xff]   ;;  %vm990_vm3 = vmand %vm56_vm2, %vm57_vm1  ;;  %vm138_vm9 = vcmask 1043457   ;;  %vm90_vm10 = vsmask.f32 7938  ;;  %vm145_vm12 = vcmask 1041408  }
   0x4   :  { %776 = vmatprep.subr.bf16.mxu0 %v903_v0  ;;  %804 = vmatprep.subr.bf16.mxu1 %v903_v0  ;;  %v883_v8 = vld [vmem:[%s1145_s3 + $0x58] sm:$0xff]   ;;  %v885_v10 = vld [vmem:[%s1145_s3 + $0x60] sm:$0xff]   ;;  %v886_v18 = vld [vmem:[%s1145_s3 + $0x28] sm:$0xff]   ;;  %vm139_vm11 = vsmask.f32 7942 }
   0x5   :  { %v733_v11 = vld [vmem:[%s1146_s0] sm:$0xff]   ;;  %v887_v20 = vld [vmem:[%s1145_s3 + $0x68] sm:$0xff]   ;;  %v888_v24 = vld [vmem:[%s1145_s3 + $0x30] sm:$0xff]   ;;  %vm114_vm15 = vsmask.f32 5392 }
   0x6   :  { %v660_v12 = vld [vmem:[%s1147_s1] ss:$0 sm:$0xff]  ;;  %v734_v13 = vunpack.c.l.bf16 %v733_v11  ;;  %v735_v14 = vunpack.c.h.bf16 %v733_v11  ;;  %v740_v23 = vld [vmem:[%s1146_s0 + $0x8] sm:$0xff]   ;;  %vm1012_vm7 = vmand %vm103_vm4, %vm104_vm5 }
   0x7   :  { %777 = vmatpush3.bf16.msra.mxu0 %v878_v3  ;;  %805 = vmatpush3.bf16.msra.mxu1 %v879_v4  ;;  %v661_v15 = vld [vmem:[%s1148_s2] ss:$0 sm:$0xff]  ;;  %v738_v27 = vunpack.c.l.bf16 %v740_v23  ;;  %v739_v28 = vunpack.c.h.bf16 %v740_v23  ;;  %v106_v29 = vld [vmem:[#allocation2 + $0x8] sm:$0x2]  ;;  %v889_v31 = vld [vmem:[%s1145_s3 + $0x70] sm:$0xff]  }
   0x8   :  { %778 = vmatprep.subr.bf16.mxu0 %v903_v0  ;;  %806 = vmatprep.subr.bf16.mxu1 %v903_v0  ;;  %v59_v17 = vld [vmem:[#allocation2] sm:$0x1]  ;;  %v35_v21 = vmul.f32 %v734_v13, %v660_v12  ;;  %v36_v22 = vmul.f32 %v735_v14, %v660_v12  ;;  %v107_v36 = vsel %vm1012_vm7, 0, %v106_v29  ;;  %v890_v37 = vld [vmem:[%s1145_s3 + $0x38] sm:$0xff]   ;;  %vm1033_vm13 = vmor %vm57_vm1, %vm67_vm8 }
   0x9   :  { %v60_v19 = vsel %vm990_vm3, 0, %v59_v17  ;;  %v37_v34 = vmul.f32 %v738_v27, %v660_v12  ;;  %v38_v35 = vmul.f32 %v739_v28, %v660_v12  ;;  %108 = vst [vmem:[#allocation2 + $0x8] sm:$0x2] %v107_v36  ;;  %v891_v42 = vld [vmem:[%s1145_s3 + $0x78] sm:$0xff]   ;;  %v96_v50 = vld [vmem:[#allocation2 + $0x8] sm:$0x1]  ;;  %vm1039_vm14 = vmand %vm89_vm6, %vm90_vm10 }
   0xa   :  { %61 = vst [vmem:[#allocation2] sm:$0x1] %v60_v19  ;;  %v46_v25 = vadd.f32 %v661_v15, %v35_v21  ;;  %v47_v26 = vadd.f32 %v661_v15, %v36_v22  ;;  %vm140_vm1 = vmand %vm138_vm9, %vm139_vm11  ;;  %v147_v12 = vld [vmem:[#allocation2 + $0x10] sm:$0x3]  ;;  %v893_v16 = vld [vmem:[%s1145_s3 + $0x80] sm:$0xff]  }
   0xb   :  { %779 = vmatpush3.bf16.msra.mxu0 %v880_v5  ;;  %807 = vmatpush3.bf16.msra.mxu1 %v881_v6  ;;  %v48_v40 = vadd.f32 %v661_v15, %v37_v34  ;;  %v49_v41 = vadd.f32 %v661_v15, %v38_v35  ;;  %vm115_vm6 = vmor %vm104_vm5, %vm114_vm15  ;;  %v894_v22 = vld [vmem:[%s1145_s3 + $0x88] sm:$0xff]   ;;  %v896_v23 = vld [vmem:[%s1145_s3 + $0x90] sm:$0xff]  }
   0xc   :  { %780 = vmatprep.subr.bf16.mxu0 %v903_v0  ;;  %808 = vmatprep.subr.bf16.mxu1 %v903_v0  ;;  %v50_v32 = vmax.f32 %v46_v25, 0.0  ;;  %v51_v33 = vmax.f32 %v47_v26, 0.0  ;;  %vm146_vm7 = vmand %vm145_vm12, %vm104_vm5  ;;  %v897_v27 = vld [vmem:[%s1145_s3 + $0x98] sm:$0xff]   ;;  %v899_v28 = vld [vmem:[%s1145_s3 + $0xa0] sm:$0xff]  }
   0xd   :  { %v52_v48 = vmax.f32 %v48_v40, 0.0  ;;  %v53_v49 = vmax.f32 %v49_v41, 0.0  ;;  %v900_v30 = vld [vmem:[%s1145_s3 + $0xa8] sm:$0xff]  }
   0xe   :  { %v728_v38 = vpack.c.bf16 %v50_v32, %v50_v32  ;;  %v729_v39 = vpack.c.bf16 %v51_v33, %v51_v33  ;;  %v902_v32 = vld [vmem:[%s1145_s3 + $0xb8] sm:$0xff]  }
   0xf   :  { %781 = vmatpush3.bf16.msra.mxu0 %v882_v7  ;;  %809 = vmatpush3.bf16.msra.mxu1 %v883_v8  ;;  %v730_v55 = vpack.c.bf16 %v52_v48, %v52_v48  ;;  %v731_v56 = vpack.c.bf16 %v53_v49, %v53_v49 }
  0x10   :  { %782 = vmatprep.subr.bf16.mxu0 %v903_v0  ;;  %810 = vmatprep.subr.bf16.mxu1 %v903_v0  ;;  %v70_v43 = vshrl.u32 %v728_v38, 16  ;;  %v73_v44 = vshll.u32 %v728_v38, 16  ;;  %v78_v45 = vshrl.u32 %v729_v39, 16  ;;  %v81_v46 = vshll.u32 %v729_v39, 16 }
  0x11   :  { %v92_v54 = vld [vmem:[#allocation2] sm:$0xf]  ;;  %v117_v61 = vshrl.u32 %v730_v55, 16  ;;  %v120_v62 = vshll.u32 %v730_v55, 16  ;;  %v126_v63 = vshrl.u32 %v731_v56, 16  ;;  %v129_v1 = vshll.u32 %v731_v56, 16 }
  0x12   :  { %v72_v51 = vrot.slane %v70_v43, 7  ;;  %v80_v52 = vrot.slane %v78_v45, 7 }
  0x13   :  { %783 = vmatpush3.bf16.msra.mxu0 %v884_v9  ;;  %811 = vmatpush3.bf16.msra.mxu1 %v885_v10  ;;  %v119_v5 = vrot.slane %v117_v61, 6  ;;  %v122_v6 = vrot.slane %v120_v62, 7  ;;  %v128_v7 = vrot.slane %v126_v63, 6  ;;  %v131_v8 = vrot.slane %v129_v1, 7  ;;  %v141_v9 = vld [vmem:[#allocation2 + $0x8] sm:$0xe] }
  0x14   :  { %784 = vmatprep.subr.bf16.mxu0 %v903_v0  ;;  %812 = vmatprep.subr.bf16.mxu1 %v903_v0  ;;  %v75_v57 = vor.u32 %v73_v44, %v72_v51  ;;  %v76_v58 = vrot.slane %v72_v51, 4  ;;  %v83_v59 = vor.u32 %v81_v46, %v80_v52  ;;  %v85_v60 = vrot.slane %v80_v52, 4 }
  0x15   :  { %v123_v10 = vor.u32 %v122_v6, %v119_v5  ;;  %v132_v11 = vor.u32 %v131_v8, %v128_v7 }
  0x16   :  { %v84_v2 = vsel %vm1033_vm13, %v76_v58, %v83_v59  ;;  %v93_v3 = vsel %vm1039_vm14, %v75_v57, %v92_v54  ;;  %v97_v4 = vsel %vm990_vm3, %v85_v60, %v96_v50  ;;  %vm99_vm3 = vmand %vm56_vm2, %vm90_vm10 }
  0x17   :  { %785 = vmatpush3.bf16.msra.mxu0 %v886_v18  ;;  %813 = vmatpush3.bf16.msra.mxu1 %v887_v20  ;;  %94 = vst [vmem:[#allocation2] sm:$0xf] %v93_v3  ;;  %95 = vst [vmem:[#allocation2 + $0x4] sm:$0xf] %v84_v2  ;;  %v124_v13 = vrot.slane %v123_v10, 4  ;;  %v142_v14 = vsel %vm140_vm1, %v123_v10, %v141_v9  ;;  %v134_v15 = vrot.slane %v132_v11, 4 }
  0x18   :  { %786 = vmatprep.subr.bf16.mxu0 %v903_v0  ;;  %814 = vmatprep.subr.bf16.mxu1 %v903_v0  ;;  %98 = vst [vmem:[#allocation2 + $0x8] sm:$0x1] %v97_v4  ;;  %143 = vst [vmem:[#allocation2 + $0x8] sm:$0xe] %v142_v14 }
  0x19   :  { %v133_v17 = vsel %vm115_vm6, %v124_v13, %v132_v11  ;;  %v148_v18 = vsel %vm146_vm7, %v134_v15, %v147_v12  ;;  %vm150_vm2 = vmand %vm103_vm4, %vm139_vm11  ;;  %vm540_vm4 = vcmask 1046528  }
  0x1a   :  { %144 = vst [vmem:[#allocation2 + $0xc] sm:$0xf] %v133_v17  ;;  %149 = vst [vmem:[#allocation2 + $0x10] sm:$0x3] %v148_v18 }
  0x1b   :  { %787 = vmatpush3.bf16.msra.mxu0 %v888_v24  ;;  %815 = vmatpush3.bf16.msra.mxu1 %v889_v31  ;;  %v901_v31 = vld [vmem:[%s1145_s3 + $0xb0] sm:$0xff]  }
  0x1c   :  { %788 = vmatprep.subr.bf16.mxu0 %v903_v0  ;;  %816 = vmatprep.subr.bf16.mxu1 %v903_v0 }
  0x1e   :  { %v892_v19 = vld [vmem:[#allocation2] sm:$0xff]  }
  0x1f   :  { %789 = vmatpush3.bf16.msra.mxu0 %v890_v37  ;;  %817 = vmatpush3.bf16.msra.mxu1 %v891_v42  ;;  %v100_v20 = vld [vmem:[#allocation2 + $0x8] sm:$0x1] }
  0x20   :  { %830 = vmatprep.subr.bf16.mxu0 %v903_v0  ;;  %858 = vmatprep.subr.bf16.mxu1 %v903_v0  ;;  %v101_v21 = vsel %vm99_vm3, 0, %v100_v20 }
  0x21   :  { %102 = vst [vmem:[#allocation2 + $0x8] sm:$0x1] %v101_v21  ;;  %v151_v24 = vld [vmem:[#allocation2 + $0x10] sm:$0x2] }
  0x22   :  { %819 = vmatmul.mubr.bf16.vlgmr.msra.gmra.mrb[0].mxu1 %v892_v19  ;;  %791 = vmatmul.mubr.bf16.vlgmr.msra.gmra.mrb[0].mxu0 %v892_v19  ;;  %v152_v25 = vsel %vm150_vm2, 0, %v151_v24  ;;  %v898_v29 = vld [vmem:[#allocation2 + $0x10] ss:$0 sps:$4 sm:$0x33]  }
  0x23   :  { %831 = vmatpush3.bf16.msra.mxu0 %v893_v16  ;;  %866 = vmatpush3.bf16.msra.mxu1 %v893_v16  ;;  %153 = vst [vmem:[#allocation2 + $0x10] sm:$0x2] %v152_v25 }
  0x24   :  { %832 = vmatprep.subr.bf16.mxu0 %v903_v0  ;;  %859 = vmatprep.subr.bf16.mxu1 %v903_v0 }
  0x25   :  { %822 = vmatprep.mubr.msk.bf16.mxu1 %vm904_vm0, %v903_v0  ;;  %794 = vmatprep.mubr.msk.bf16.mxu0 %vm904_vm0, %v903_v0 }
  0x27   :  { %833 = vmatpush3.bf16.msra.mxu0 %v894_v22  ;;  %867 = vmatpush3.bf16.msra.mxu1 %v894_v22 }
  0x28   :  { %834 = vmatprep.subr.bf16.mxu0 %v903_v0  ;;  %860 = vmatprep.subr.bf16.mxu1 %v903_v0  ;;  %v895_v26 = vld [vmem:[#allocation2 + $0x8] sm:$0xff]  }
  0x2a   :  { %823 = vmatmul.mubr.bf16.gmra.mrb[4].mxu1 %v895_v26  ;;  %795 = vmatmul.mubr.bf16.gmra.mrb[4].mxu0 %v895_v26 }
  0x2b   :  { %835 = vmatpush3.bf16.msra.mxu0 %v896_v23  ;;  %868 = vmatpush3.bf16.msra.mxu1 %v896_v23 }
  0x2c   :  { %836 = vmatprep.subr.bf16.mxu0 %v903_v0  ;;  %861 = vmatprep.subr.bf16.mxu1 %v903_v0 }
  0x2d   :  { %826 = vmatprep.mubr.msk.bf16.mxu1 %vm904_vm0, %v903_v0  ;;  %798 = vmatprep.mubr.msk.bf16.mxu0 %vm904_vm0, %v903_v0 }
  0x2f   :  { %837 = vmatpush3.bf16.msra.mxu0 %v897_v27  ;;  %869 = vmatpush3.bf16.msra.mxu1 %v897_v27 }
  0x30   :  { %838 = vmatprep.subr.bf16.mxu0 %v903_v0  ;;  %862 = vmatprep.subr.bf16.mxu1 %v903_v0 }
  0x32   :  { %827 = vmatmul.mubr.bf16.gmra.mrb[8].mxu1 %v898_v29  ;;  %799 = vmatmul.mubr.bf16.gmra.mrb[8].mxu0 %v898_v29 }
  0x33   :  { %839 = vmatpush3.bf16.msra.mxu0 %v899_v28  ;;  %870 = vmatpush3.bf16.msra.mxu1 %v899_v28 }
  0x34   :  { %840 = vmatprep.subr.bf16.mxu0 %v903_v0  ;;  %863 = vmatprep.subr.bf16.mxu1 %v903_v0 }
  0x35   :  { %850 = vmatprep.mubr.msk.bf16.mxu1 %vm904_vm0, %v903_v0  ;;  %846 = vmatprep.mubr.msk.bf16.mxu0 %vm904_vm0, %v903_v0 }
  0x37   :  { %841 = vmatpush3.bf16.msra.mxu0 %v900_v30  ;;  %871 = vmatpush3.bf16.msra.mxu1 %v900_v30 }
  0x38   :  { %842 = vmatprep.subr.bf16.mxu0 %v903_v0  ;;  %864 = vmatprep.subr.bf16.mxu1 %v903_v0 }
  0x3b   :  { %843 = vmatpush3.bf16.msra.mxu0 %v901_v31  ;;  %872 = vmatpush3.bf16.msra.mxu1 %v901_v31 }
  0x3c   :  { %844 = vmatprep.subr.bf16.mxu0 %v903_v0  ;;  %865 = vmatprep.subr.bf16.mxu1 %v903_v0 }
  0x3f   :  { %845 = vmatpush3.bf16.msra.mxu0 %v902_v32  ;;  %873 = vmatpush3.bf16.msra.mxu1 %v902_v32 }
  0x42   :  { %847 = vmatmul.mubr.bf16.vlgmr.msra.gmra.mrb[12].mxu0 %v892_v19  ;;  %851 = vmatmul.mubr.bf16.vlgmr.msra.gmra.mrb[12].mxu1 %v895_v26 }
  0x43   :  { %854 = vmatprep.mubr.msk.bf16.mxu1 %vm904_vm0, %v903_v0  ;;  %vm553_vm0 = vcmask 1045504  }
  0x4a   :  { %855 = vmatmul.mubr.bf16.gmra.mrb[16].mxu1 %v898_v29 }
  0xf5   :  { %v394_v33 = vpop.f32.mrb[0].mxu1  ;;  %v273_v34 = vpop.f32.mrb[0].mxu0 }
  0xf6   :  { %v541_v35 = vrot.slane %v394_v33, 1  ;;  %v820_v36 = vpop.f32.mrb[1].mxu1  ;;  %v792_v37 = vpop.f32.mrb[1].mxu0 }
  0xf7   :  { %v397_v38 = vpop.f32.mrb[2].mxu1  ;;  %v276_v39 = vpop.f32.mrb[2].mxu0 }
  0xf8   :  { %v542_v40 = vrot.slane %v397_v38, 1  ;;  %v821_v41 = vpop.f32.mrb[3].mxu1  ;;  %v793_v42 = vpop.f32.mrb[3].mxu0 }
  0xfa   :  { %v543_v43 = vsel %vm540_vm4, %v541_v35, %v542_v40 }
  0xfb   :  { %v548_v44 = vadd.f32 %v543_v43, %v273_v34 }
  0xfd   :  { %v402_v45 = vpop.f32.mrb[4].mxu1  ;;  %v281_v0 = vpop.f32.mrb[4].mxu0 }
  0xfe   :  { %v544_v46 = vrot.slane %v402_v45, 1  ;;  %v824_v47 = vpop.f32.mrb[5].mxu1  ;;  %v796_v52 = vpop.f32.mrb[5].mxu0 }
  0xff   :  { %v405_v48 = vpop.f32.mrb[6].mxu1  ;;  %v284_v54 = vpop.f32.mrb[6].mxu0 }
 0x100   :  { %v545_v49 = vsel %vm540_vm4, %v542_v40, %v544_v46  ;;  %v585_v50 = vrot.slane %v405_v48, 1  ;;  %v825_v51 = vpop.f32.mrb[7].mxu1  ;;  %v797_v56 = vpop.f32.mrb[7].mxu0 }
 0x101   :  { %v549_v53 = vadd.f32 %v545_v49, %v276_v39 }
 0x102   :  { %v586_v55 = vsel %vm540_vm4, %v544_v46, %v585_v50 }
 0x103   :  { %v592_v57 = vadd.f32 %v586_v55, %v281_v0 }
 0x105   :  { %v410_v58 = vpop.f32.mrb[8].mxu1  ;;  %v289_v62 = vpop.f32.mrb[8].mxu0 }
 0x106   :  { %v587_v59 = vrot.slane %v410_v58, 1  ;;  %v828_v60 = vpop.f32.mrb[9].mxu1  ;;  %v800_v3 = vpop.f32.mrb[9].mxu0 }
 0x107   :  { %v413_v61 = vpop.f32.mrb[10].mxu1  ;;  %v292_v5 = vpop.f32.mrb[10].mxu0 }
 0x108   :  { %v588_v63 = vsel %vm540_vm4, %v585_v50, %v587_v59  ;;  %v829_v1 = vpop.f32.mrb[11].mxu1  ;;  %v594_v2 = vadd.f32 %v587_v59, %v289_v62  ;;  %v801_v6 = vpop.f32.mrb[11].mxu0 }
 0x109   :  { %v593_v4 = vadd.f32 %v588_v63, %v284_v54 }
 0x115   :  { %v515_v7 = vpop.f32.mrb[12].mxu0  ;;  %v523_v8 = vpop.f32.mrb[12].mxu1 }
 0x116   :  { %v554_v9 = vrot.slane %v515_v7, 2  ;;  %v848_v10 = vpop.f32.mrb[13].mxu0  ;;  %v852_v11 = vpop.f32.mrb[13].mxu1  ;;  %v557_v14 = vrot.slane %v523_v8, 2 }
 0x117   :  { %v518_v12 = vpop.f32.mrb[14].mxu0  ;;  %v526_v13 = vpop.f32.mrb[14].mxu1 }
 0x118   :  { %v555_v15 = vrot.slane %v518_v12, 2  ;;  %v597_v16 = vrot.slane %v526_v13, 2  ;;  %v853_v17 = vpop.f32.mrb[15].mxu1  ;;  %v849_v18 = vpop.f32.mrb[15].mxu0 }
 0x11a   :  { %v556_v19 = vsel %vm553_vm0, %v554_v9, %v555_v15  ;;  %v558_v20 = vsel %vm553_vm0, %v555_v15, %v557_v14  ;;  %v598_v21 = vsel %vm553_vm0, %v557_v14, %v597_v16 }
 0x11b   :  { %v561_v22 = vadd.f32 %v556_v19, %v548_v44  ;;  %v562_v23 = vadd.f32 %v558_v20, %v549_v53  ;;  %v604_v24 = vadd.f32 %v598_v21, %v592_v57 }
 0x11d   :  { %563 = vst [vmem:[%s1149_s4] sm:$0xff] %v561_v22  ;;  %564 = vst [vmem:[%s1149_s4 + $0x8] sm:$0xff] %v562_v23  ;;  %v565_v25 = vadd.f32 %v562_v23, %v561_v22  ;;  %v573_v26 = vmul.f32 %v561_v22, %v561_v22  ;;  %v574_v27 = vmul.f32 %v562_v23, %v562_v23  ;;  %v531_v28 = vpop.f32.mrb[16].mxu1  ;;  %v614_v43 = vrot.slane %v604_v24, 2 }
 0x11e   :  { %725 = vst [vmem:[%s1149_s4 + $0xe] sm:$0xfc] %v604_v24  ;;  %v599_v29 = vrot.slane %v531_v28, 2  ;;  %v856_v30 = vpop.f32.mrb[17].mxu1  ;;  %v629_v40 = vmul.f32 %v604_v24, %v604_v24 }
 0x11f   :  { %v566_v31 = vrot.slane %v565_v25, 4  ;;  %v575_v32 = vadd.f32 %v574_v27, %v573_v26  ;;  %v534_v33 = vpop.f32.mrb[18].mxu1 }
 0x120   :  { %v600_v34 = vsel %vm553_vm0, %v597_v16, %v599_v29  ;;  %v606_v35 = vadd.f32 %v599_v29, %v594_v2  ;;  %v857_v36 = vpop.f32.mrb[19].mxu1  ;;  %v635_v50 = vrot.slane %v629_v40, 2 }
 0x121   :  { %v576_v37 = vrot.slane %v575_v32, 4  ;;  %v605_v38 = vadd.f32 %v600_v34, %v593_v4  ;;  %v567_v39 = vadd.f32 %v566_v31, %v565_v25 }
 0x122   :  { %727 = vst [vmem:[%s1149_s4 + $0x1e] sm:$0x3] %v606_v35  ;;  %v617_v41 = vrot.slane %v606_v35, 2  ;;  %v631_v42 = vmul.f32 %v606_v35, %v606_v35 }
 0x123   :  { %726 = vst [vmem:[%s1149_s4 + $0x16] sm:$0xff] %v605_v38  ;;  %v615_v44 = vrot.slane %v605_v38, 2  ;;  %v630_v45 = vmul.f32 %v605_v38, %v605_v38  ;;  %v577_v47 = vadd.f32 %v576_v37, %v575_v32  ;;  %v568_v49 = vrot.slane %v567_v39, 2 }
 0x124   :  { %v638_v46 = vrot.slane %v631_v42, 2 }
 0x125   :  { %v616_v48 = vsel %vm553_vm0, %v614_v43, %v615_v44  ;;  %v618_v0 = vsel %vm553_vm0, %v615_v44, %v617_v41  ;;  %v636_v52 = vrot.slane %v630_v45, 2  ;;  %v578_v56 = vrot.slane %v577_v47, 2 }
 0x126   :  { %v621_v51 = vadd.f32 %v618_v0, %v616_v48  ;;  %v569_v58 = vadd.f32 %v568_v49, %v567_v39 }
 0x127   :  { %v637_v54 = vsel %vm553_vm0, %v635_v50, %v636_v52  ;;  %v639_v55 = vsel %vm553_vm0, %v636_v52, %v638_v46  ;;  %v579_v62 = vadd.f32 %v578_v56, %v577_v47 }
 0x128   :  { %v622_v53 = vrot.slane %v621_v51, 4  ;;  %v642_v57 = vadd.f32 %v639_v55, %v637_v54  ;;  %v570_v1 = vrot.slane %v569_v58, 1 }
 0x129   :  { %v580_v5 = vrot.slane %v579_v62, 1 }
 0x12a   :  { %v623_v59 = vadd.f32 %v622_v53, %v621_v51  ;;  %v643_v60 = vrot.slane %v642_v57, 4  ;;  %v571_v7 = vadd.f32 %v570_v1, %v569_v58 }
 0x12b   :  { %v581_v11 = vadd.f32 %v580_v5, %v579_v62 }
 0x12c   :  { %v624_v61 = vrot.slane %v623_v59, 2  ;;  %v644_v63 = vadd.f32 %v643_v60, %v642_v57 }
 0x12e   :  { %v625_v2 = vadd.f32 %v624_v61, %v623_v59  ;;  %v645_v3 = vrot.slane %v644_v63, 2 }
 0x130   :  { %v626_v4 = vrot.slane %v625_v2, 1  ;;  %v646_v6 = vadd.f32 %v645_v3, %v644_v63 }
 0x132   :  { %v627_v8 = vadd.f32 %v626_v4, %v625_v2  ;;  %v647_v9 = vrot.slane %v646_v6, 1 }
 0x134   :  { %v628_v10 = vadd.f32 %v627_v8, %v571_v7  ;;  %v648_v12 = vadd.f32 %v647_v9, %v646_v6 }
 0x136   :  { %650 = vst [vmem:[%s1150_s5] sm:$0x1] %v628_v10  ;;  %v649_v13 = vadd.f32 %v648_v12, %v581_v11 }
 0x138   :  { %651 = vst [vmem:[%s1150_s5 + $0x1] sm:$0x1] %v649_v13 }

</bundles_post_ra>
